<compile_context>
chip_gen: v6e
topology: v6e:2x2x1
jax: 0.10.0
libtpu: 0.0.40
codegen_flags: <defaults>
</compile_context>

<pallas_src>
import functools

import jax
import jax.numpy as jnp
from jax import lax
from jax.experimental import pallas as pl
from jax.experimental.pallas import tpu as pltpu

EPS = 1e-5
_LANE = 128
_MAX_TILE = 1024   # lane cap: bounds vreg pressure (each (8, tile) f32 ~= 8 vregs)


def _round_up(x, m):
    return (x + m - 1) // m * m


def _conv1x1(w, x):
    """(O, K) @ (nb, K, T) -> (nb, O, T) in f32.

    K <= 4 (or batched blocks in the small-problem fast path) -> short VPU
    broadcast-MAC chain.  Otherwise -> MXU dot, which frees the binding VALU
    slot on v6e/v7x."""
    _, k_dim = w.shape
    nb = x.shape[0]
    if k_dim > 4 and nb == 1:
        y = lax.dot_general(w, x[0], (((1,), (0,)), ((), ())),
                            preferred_element_type=jnp.float32)
        return y[None, :, :]
    acc = w[None, :, 0:1] * x[:, 0:1, :]
    for k in range(1, k_dim):
        acc = acc + w[None, :, k:k + 1] * x[:, k:k + 1, :]
    return acc


def _tripple_conv_kernel(x_ref, w1_ref, w2_ref, g_ref, b_ref, o_ref,
                         sum1_ref, sq1_ref, sum2_ref, sq2_ref, *,
                         m_total, hw, tile, fast, need_mask):
    # x_ref: (nb, Cin, T)  w1_ref: (Cout, Cin)  w2_ref: (Cout, Cout)
    # g_ref/b_ref: (1, Cout, 1)                 o_ref: (nb, Cout, T)
    # scratch: per-channel (1, Cout, 1) f32 running sum / sum-of-squares.
    p = pl.program_id(0)          # 0: stats of y1, 1: stats of y2, 2: emit
    if fast:
        col0 = 0
    else:
        n = pl.program_id(1)
        t = pl.program_id(2)
        col0 = t * tile

    inv_m = 1.0 / float(m_total)
    gamma = g_ref[...]
    beta = b_ref[...]
    x = x_ref[...]
    w1 = w1_ref[...]
    w2 = w2_ref[...]
    t_size = x.shape[-1]

    def folded_bn(s_ref, q_ref):
        # Train-mode BN as y -> scale*y + shift; single-pass var clamped at 0.
        # TODO(synk): switch to shifted/Welford accumulation for very large
        # N*HW where E[y^2]-mean^2 can cancel catastrophically.
        mean = s_ref[...] * inv_m
        var = jnp.maximum(q_ref[...] * inv_m - mean * mean, 0.0)
        scale = gamma * lax.rsqrt(var + EPS)          # (1, Cout, 1)
        shift = beta - mean * scale
        return scale, shift

    def accumulate(y, s_ref, q_ref):
        s_ref[...] += jnp.sum(jnp.sum(y, axis=2, keepdims=True),
                              axis=0, keepdims=True)
        q_ref[...] += jnp.sum(jnp.sum(y * y, axis=2, keepdims=True),
                              axis=0, keepdims=True)

    def z1_tile():
        # BN1 scale folded into the (Cout, Cin) weights: one tiny multiply
        # instead of a full-tile scale.
        scale1, shift1 = folded_bn(sum1_ref, sq1_ref)
        w1f = w1 * scale1[0]                          # (Cout, Cin)
        return jnp.maximum(_conv1x1(w1f, x) + shift1, 0.0)

    # ---- pass 0: per-channel sum / sumsq of y1 = conv1(x) -------------------
    @pl.when(p == 0)
    def _():
        def init():
            sum1_ref[...] = jnp.zeros_like(sum1_ref)
            sq1_ref[...] = jnp.zeros_like(sq1_ref)
            sum2_ref[...] = jnp.zeros_like(sum2_ref)
            sq2_ref[...] = jnp.zeros_like(sq2_ref)
        if fast:
            init()
        else:
            pl.when(jnp.logical_and(n == 0, t == 0))(init)
        y1 = _conv1x1(w1, x)   # raw conv1; padded columns are exactly zero
        accumulate(y1, sum1_ref, sq1_ref)

    # ---- pass 1: per-channel sum / sumsq of y2 = conv2(relu(BN1(y1))) -------
    @pl.when(p == 1)
    def _():
        z1 = z1_tile()
        if need_mask:
            # padded columns of z1 are relu(shift1) != 0 -> zero them so the
            # conv2 statistics only see the HW real pixels.
            lane = lax.broadcasted_iota(jnp.int32, (1, 1, t_size), 2)
            z1 = jnp.where(lane < (hw - col0), z1, 0.0)
        y2 = _conv1x1(w2, z1)
        accumulate(y2, sum2_ref, sq2_ref)

    # ---- pass 2: emit relu(BN2(y2)) ------------------------------------------
    @pl.when(p == 2)
    def _():
        z1 = z1_tile()
        scale2, shift2 = folded_bn(sum2_ref, sq2_ref)
        w2f = w2 * scale2[0]                          # (Cout, Cout)
        out = jnp.maximum(_conv1x1(w2f, z1) + shift2, 0.0)
        o_ref[...] = out.astype(o_ref.dtype)


def tripple_conv(x_nchw, w1, b1, w2, b2, gamma, beta):
    """Forward of TrippleConv (training-mode BatchNorm). x_nchw: (N, Cin, H, W).

    b1/b2 are accepted for API parity with nn.Conv2d but not used: a constant
    per-channel bias added right before a train-mode BatchNorm is exactly
    cancelled by the mean subtraction."""
    del b1, b2
    N, Cin, H, W = x_nchw.shape
    Cout = w1.shape[0]
    HW = H * W
    m_total = N * HW

    # Lane-dense tiling: tile is a multiple of 128 capped at 1024 lanes.
    hw128 = _round_up(HW, _LANE)
    tile = min(hw128, _MAX_TILE)
    hw_pad = _round_up(HW, tile)
    n_tiles = hw_pad // tile
    need_mask = hw_pad != HW

    x3 = x_nchw.reshape(N, Cin, HW)                 # free reshape, channel-major
    if need_mask:
        x3 = jnp.pad(x3, ((0, 0), (0, 0), (0, hw_pad - HW)))

    # Small-problem fast path: one block covers the whole tensor, grid = (3,).
    fast = (n_tiles == 1
            and N * Cout * hw_pad <= 32 * 1024
            and max(Cin, Cout) <= 16)

    kernel = functools.partial(_tripple_conv_kernel, m_total=m_total, hw=HW,
                               tile=tile, fast=fast, need_mask=need_mask)

    gb = gamma.reshape(1, Cout, 1).astype(jnp.float32)
    bb = beta.reshape(1, Cout, 1).astype(jnp.float32)

    if fast:
        grid = (3,)
        x_spec = pl.BlockSpec((N, Cin, hw_pad), lambda p: (0, 0, 0))
        w1_spec = pl.BlockSpec((Cout, Cin), lambda p: (0, 0))
        w2_spec = pl.BlockSpec((Cout, Cout), lambda p: (0, 0))
        v_spec = pl.BlockSpec((1, Cout, 1), lambda p: (0, 0, 0))
        out_spec = pl.BlockSpec((N, Cout, hw_pad), lambda p: (0, 0, 0))
        dims = ("arbitrary",)
    else:
        grid = (3, N, n_tiles)
        x_spec = pl.BlockSpec((1, Cin, tile), lambda p, n, t: (n, 0, t))
        w1_spec = pl.BlockSpec((Cout, Cin), lambda p, n, t: (0, 0))
        w2_spec = pl.BlockSpec((Cout, Cout), lambda p, n, t: (0, 0))
        v_spec = pl.BlockSpec((1, Cout, 1), lambda p, n, t: (0, 0, 0))
        # Park the output on block (0,0,0) for the two statistics passes so no
        # garbage writeback happens before pass 2 produces real data.
        out_spec = pl.BlockSpec(
            (1, Cout, tile),
            lambda p, n, t: (jnp.where(p == 2, n, 0), 0,
                             jnp.where(p == 2, t, 0)))
        # All grid axes feed the cross-tile BN reduction -> keep serialized.
        dims = ("arbitrary", "arbitrary", "arbitrary")

    out3 = pl.pallas_call(
        kernel,
        out_shape=jax.ShapeDtypeStruct((N, Cout, hw_pad), x_nchw.dtype),
        grid_spec=pltpu.PrefetchScalarGridSpec(
            num_scalar_prefetch=0,
            grid=grid,
            in_specs=[x_spec, w1_spec, w2_spec, v_spec, v_spec],
            out_specs=out_spec,
            scratch_shapes=[pltpu.VMEM((1, Cout, 1), jnp.float32)
                            for _ in range(4)],
        ),
        compiler_params=pltpu.CompilerParams(dimension_semantics=dims),
    )(x3, w1, w2, gb, bb)

    if need_mask:
        out3 = out3[:, :, :HW]
    return out3.reshape(N, Cout, H, W)


def _reference(x_nchw, w1, b1, w2, b2, gamma, beta):
    """Pure-JAX reference of the PyTorch forward (training-mode BN, with biases)."""
    def conv1x1(x, w, b):
        return jnp.einsum('nchw,oc->nohw', x, w) + b[None, :, None, None]

    def bn_relu(y):
        mean = jnp.mean(y, axis=(0, 2, 3), keepdims=True)
        var = jnp.mean((y - mean) ** 2, axis=(0, 2, 3), keepdims=True)
        y_hat = (y - mean) * lax.rsqrt(var + EPS)
        y_hat = y_hat * gamma[None, :, None, None] + beta[None, :, None, None]
        return jnp.maximum(y_hat, 0.0)

    z1 = bn_relu(conv1x1(x_nchw, w1, b1))
    return bn_relu(conv1x1(z1, w2, b2))


if __name__ == "__main__":
    N, Cin, Cout, H, W = 2, 4, 8, 16, 16

    key = jax.random.PRNGKey(0)
    k_x, k_w1, k_b1, k_w2, k_b2, k_g, k_bt = jax.random.split(key, 7)

    x = jax.random.normal(k_x, (N, Cin, H, W), dtype=jnp.float32)
    w1 = jax.random.normal(k_w1, (Cout, Cin), dtype=jnp.float32) * 0.5
    b1 = jax.random.normal(k_b1, (Cout,), dtype=jnp.float32) * 0.1
    w2 = jax.random.normal(k_w2, (Cout, Cout), dtype=jnp.float32) * 0.5
    b2 = jax.random.normal(k_b2, (Cout,), dtype=jnp.float32) * 0.1
    # non-default (learned-state) BN affine params to exercise the gamma/beta path
    gamma = 1.0 + 0.1 * jax.random.normal(k_g, (Cout,), dtype=jnp.float32)
    beta = 0.1 * jax.random.normal(k_bt, (Cout,), dtype=jnp.float32)

    out = jax.block_until_ready(tripple_conv(x, w1, b1, w2, b2, gamma, beta))
    ref = _reference(x, w1, b1, w2, b2, gamma, beta)

    assert out.shape == (N, Cout, H, W), out.shape
    assert jnp.allclose(out, ref, atol=1e-4, rtol=1e-4), \
        float(jnp.max(jnp.abs(out - ref)))
    print("KERNEL_OK")
</pallas_src>

<mosaic_0001>
module attributes {stable_mosaic.version = 11 : i64} {
  func.func @_tripple_conv_kernel(%arg0: i32, %arg1: memref<2x4x256xf32, #tpu.memory_space<vmem>>, %arg2: memref<8x4xf32, #tpu.memory_space<vmem>>, %arg3: memref<8x8xf32, #tpu.memory_space<vmem>>, %arg4: memref<1x8x1xf32, #tpu.memory_space<vmem>>, %arg5: memref<1x8x1xf32, #tpu.memory_space<vmem>>, %arg6: memref<2x8x256xf32, #tpu.memory_space<vmem>>, %arg7: memref<1x8x1xf32, #tpu.memory_space<vmem>>, %arg8: memref<1x8x1xf32, #tpu.memory_space<vmem>>, %arg9: memref<1x8x1xf32, #tpu.memory_space<vmem>>, %arg10: memref<1x8x1xf32, #tpu.memory_space<vmem>>) attributes {dimension_semantics = [#tpu.dimension_semantics<arbitrary>], iteration_bounds = array<i64: 3>, scalar_prefetch = 0 : i64, scratch_operands = 4 : i64, tpu.core_type = #tpu.core_type<tc>, window_params = [{pipeline_mode = #tpu.pipeline_mode<synchronous>, transform_indices = @transform_0, window_bounds = array<i64: 2, 4, 256>}, {pipeline_mode = #tpu.pipeline_mode<synchronous>, transform_indices = @transform_1, window_bounds = array<i64: 8, 4>}, {pipeline_mode = #tpu.pipeline_mode<synchronous>, transform_indices = @transform_2, window_bounds = array<i64: 8, 8>}, {pipeline_mode = #tpu.pipeline_mode<synchronous>, transform_indices = @transform_3, window_bounds = array<i64: 1, 8, 1>}, {pipeline_mode = #tpu.pipeline_mode<synchronous>, transform_indices = @transform_4, window_bounds = array<i64: 1, 8, 1>}, {pipeline_mode = #tpu.pipeline_mode<synchronous>, transform_indices = @transform_5, window_bounds = array<i64: 2, 8, 256>}]} {
    %c0 = arith.constant 0 : index
    %c0_0 = arith.constant 0 : index
    %c0_1 = arith.constant 0 : index
    %0 = vector.load %arg4[%c0, %c0_0, %c0_1] : memref<1x8x1xf32, #tpu.memory_space<vmem>>, vector<1x8x1xf32>
    %c0_2 = arith.constant 0 : index
    %c0_3 = arith.constant 0 : index
    %c0_4 = arith.constant 0 : index
    %1 = vector.load %arg5[%c0_2, %c0_3, %c0_4] : memref<1x8x1xf32, #tpu.memory_space<vmem>>, vector<1x8x1xf32>
    %c0_5 = arith.constant 0 : index
    %c0_6 = arith.constant 0 : index
    %c0_7 = arith.constant 0 : index
    %2 = vector.load %arg1[%c0_5, %c0_6, %c0_7] : memref<2x4x256xf32, #tpu.memory_space<vmem>>, vector<2x4x256xf32>
    %c0_8 = arith.constant 0 : index
    %c0_9 = arith.constant 0 : index
    %3 = vector.load %arg2[%c0_8, %c0_9] : memref<8x4xf32, #tpu.memory_space<vmem>>, vector<8x4xf32>
    %c0_10 = arith.constant 0 : index
    %c0_11 = arith.constant 0 : index
    %4 = vector.load %arg3[%c0_10, %c0_11] : memref<8x8xf32, #tpu.memory_space<vmem>>, vector<8x8xf32>
    %c0_i32 = arith.constant 0 : i32
    %5 = arith.cmpi eq, %arg0, %c0_i32 : i32
    %6 = arith.extui %5 : i1 to i32
    %c0_i32_12 = arith.constant 0 : i32
    %7 = arith.cmpi ne, %6, %c0_i32_12 : i32
    scf.if %7 {
      %cst = arith.constant 0.000000e+00 : f32
      %14 = vector.broadcast %cst : f32 to vector<1x8x1xf32>
      %c0_15 = arith.constant 0 : index
      %c0_16 = arith.constant 0 : index
      %c0_17 = arith.constant 0 : index
      %15 = vector.load %arg7[%c0_15, %c0_16, %c0_17] : memref<1x8x1xf32, #tpu.memory_space<vmem>>, vector<1x8x1xf32>
      tpu.vector_store %arg7[%c0_15, %c0_16, %c0_17], %14 {strides = array<i32>} : memref<1x8x1xf32, #tpu.memory_space<vmem>>, vector<1x8x1xf32>,
      %cst_18 = arith.constant 0.000000e+00 : f32
      %16 = vector.broadcast %cst_18 : f32 to vector<1x8x1xf32>
      %c0_19 = arith.constant 0 : index
      %c0_20 = arith.constant 0 : index
      %c0_21 = arith.constant 0 : index
      %17 = vector.load %arg8[%c0_19, %c0_20, %c0_21] : memref<1x8x1xf32, #tpu.memory_space<vmem>>, vector<1x8x1xf32>
      tpu.vector_store %arg8[%c0_19, %c0_20, %c0_21], %16 {strides = array<i32>} : memref<1x8x1xf32, #tpu.memory_space<vmem>>, vector<1x8x1xf32>,
      %cst_22 = arith.constant 0.000000e+00 : f32
      %18 = vector.broadcast %cst_22 : f32 to vector<1x8x1xf32>
      %c0_23 = arith.constant 0 : index
      %c0_24 = arith.constant 0 : index
      %c0_25 = arith.constant 0 : index
      %19 = vector.load %arg9[%c0_23, %c0_24, %c0_25] : memref<1x8x1xf32, #tpu.memory_space<vmem>>, vector<1x8x1xf32>
      tpu.vector_store %arg9[%c0_23, %c0_24, %c0_25], %18 {strides = array<i32>} : memref<1x8x1xf32, #tpu.memory_space<vmem>>, vector<1x8x1xf32>,
      %cst_26 = arith.constant 0.000000e+00 : f32
      %20 = vector.broadcast %cst_26 : f32 to vector<1x8x1xf32>
      %c0_27 = arith.constant 0 : index
      %c0_28 = arith.constant 0 : index
      %c0_29 = arith.constant 0 : index
      %21 = vector.load %arg10[%c0_27, %c0_28, %c0_29] : memref<1x8x1xf32, #tpu.memory_space<vmem>>, vector<1x8x1xf32>
      tpu.vector_store %arg10[%c0_27, %c0_28, %c0_29], %20 {strides = array<i32>} : memref<1x8x1xf32, #tpu.memory_space<vmem>>, vector<1x8x1xf32>,
      %22 = vector.extract_strided_slice %3 {offsets = [0, 0], sizes = [8, 1], strides = [1, 1]} : vector<8x4xf32> to vector<8x1xf32>
      %23 = vector.shape_cast %22 : vector<8x1xf32> to vector<1x8x1xf32>
      %24 = vector.extract_strided_slice %2 {offsets = [0, 0, 0], sizes = [2, 1, 256], strides = [1, 1, 1]} : vector<2x4x256xf32> to vector<2x1x256xf32>
      %25 = vector.broadcast %23 : vector<1x8x1xf32> to vector<2x8x256xf32>
      %26 = vector.broadcast %24 : vector<2x1x256xf32> to vector<2x8x256xf32>
      %27 = arith.mulf %25, %26 : vector<2x8x256xf32>
      %28 = vector.extract_strided_slice %3 {offsets = [0, 1], sizes = [8, 1], strides = [1, 1]} : vector<8x4xf32> to vector<8x1xf32>
      %29 = vector.shape_cast %28 : vector<8x1xf32> to vector<1x8x1xf32>
      %30 = vector.extract_strided_slice %2 {offsets = [0, 1, 0], sizes = [2, 1, 256], strides = [1, 1, 1]} : vector<2x4x256xf32> to vector<2x1x256xf32>
      %31 = vector.broadcast %29 : vector<1x8x1xf32> to vector<2x8x256xf32>
      %32 = vector.broadcast %30 : vector<2x1x256xf32> to vector<2x8x256xf32>
      %33 = arith.mulf %31, %32 : vector<2x8x256xf32>
      %34 = arith.addf %27, %33 : vector<2x8x256xf32>
      %35 = vector.extract_strided_slice %3 {offsets = [0, 2], sizes = [8, 1], strides = [1, 1]} : vector<8x4xf32> to vector<8x1xf32>
      %36 = vector.shape_cast %35 : vector<8x1xf32> to vector<1x8x1xf32>
      %37 = vector.extract_strided_slice %2 {offsets = [0, 2, 0], sizes = [2, 1, 256], strides = [1, 1, 1]} : vector<2x4x256xf32> to vector<2x1x256xf32>
      %38 = vector.broadcast %36 : vector<1x8x1xf32> to vector<2x8x256xf32>
      %39 = vector.broadcast %37 : vector<2x1x256xf32> to vector<2x8x256xf32>
      %40 = arith.mulf %38, %39 : vector<2x8x256xf32>
      %41 = arith.addf %34, %40 : vector<2x8x256xf32>
      %42 = vector.extract_strided_slice %3 {offsets = [0, 3], sizes = [8, 1], strides = [1, 1]} : vector<8x4xf32> to vector<8x1xf32>
      %43 = vector.shape_cast %42 : vector<8x1xf32> to vector<1x8x1xf32>
      %44 = vector.extract_strided_slice %2 {offsets = [0, 3, 0], sizes = [2, 1, 256], strides = [1, 1, 1]} : vector<2x4x256xf32> to vector<2x1x256xf32>
      %45 = vector.broadcast %43 : vector<1x8x1xf32> to vector<2x8x256xf32>
      %46 = vector.broadcast %44 : vector<2x1x256xf32> to vector<2x8x256xf32>
      %47 = arith.mulf %45, %46 : vector<2x8x256xf32>
      %48 = arith.addf %41, %47 : vector<2x8x256xf32>
      %c0_30 = arith.constant 0 : index
      %c0_31 = arith.constant 0 : index
      %c0_32 = arith.constant 0 : index
      %49 = vector.load %arg7[%c0_30, %c0_31, %c0_32] : memref<1x8x1xf32, #tpu.memory_space<vmem>>, vector<1x8x1xf32>
      %cst_33 = arith.constant dense<0.000000e+00> : vector<2x8xf32>
      %50 = vector.multi_reduction <add>, %48, %cst_33 [2] : vector<2x8x256xf32> to vector<2x8xf32>
      %51 = vector.shape_cast %50 : vector<2x8xf32> to vector<2x8x1xf32>
      %cst_34 = arith.constant dense<0.000000e+00> : vector<8x1xf32>
      %52 = vector.multi_reduction <add>, %51, %cst_34 [0] : vector<2x8x1xf32> to vector<8x1xf32>
      %53 = vector.shape_cast %52 : vector<8x1xf32> to vector<1x8x1xf32>
      %54 = arith.addf %49, %53 : vector<1x8x1xf32>
      %c0_35 = arith.constant 0 : index
      %c0_36 = arith.constant 0 : index
      %c0_37 = arith.constant 0 : index
      %55 = vector.load %arg7[%c0_35, %c0_36, %c0_37] : memref<1x8x1xf32, #tpu.memory_space<vmem>>, vector<1x8x1xf32>
      tpu.vector_store %arg7[%c0_35, %c0_36, %c0_37], %54 {strides = array<i32>} : memref<1x8x1xf32, #tpu.memory_space<vmem>>, vector<1x8x1xf32>,
      %c0_38 = arith.constant 0 : index
      %c0_39 = arith.constant 0 : index
      %c0_40 = arith.constant 0 : index
      %56 = vector.load %arg8[%c0_38, %c0_39, %c0_40] : memref<1x8x1xf32, #tpu.memory_space<vmem>>, vector<1x8x1xf32>
      %57 = arith.mulf %48, %48 : vector<2x8x256xf32>
      %cst_41 = arith.constant dense<0.000000e+00> : vector<2x8xf32>
      %58 = vector.multi_reduction <add>, %57, %cst_41 [2] : vector<2x8x256xf32> to vector<2x8xf32>
      %59 = vector.shape_cast %58 : vector<2x8xf32> to vector<2x8x1xf32>
      %cst_42 = arith.constant dense<0.000000e+00> : vector<8x1xf32>
      %60 = vector.multi_reduction <add>, %59, %cst_42 [0] : vector<2x8x1xf32> to vector<8x1xf32>
      %61 = vector.shape_cast %60 : vector<8x1xf32> to vector<1x8x1xf32>
      %62 = arith.addf %56, %61 : vector<1x8x1xf32>
      %c0_43 = arith.constant 0 : index
      %c0_44 = arith.constant 0 : index
      %c0_45 = arith.constant 0 : index
      %63 = vector.load %arg8[%c0_43, %c0_44, %c0_45] : memref<1x8x1xf32, #tpu.memory_space<vmem>>, vector<1x8x1xf32>
      tpu.vector_store %arg8[%c0_43, %c0_44, %c0_45], %62 {strides = array<i32>} : memref<1x8x1xf32, #tpu.memory_space<vmem>>, vector<1x8x1xf32>,
    } else {
    }
    %c1_i32 = arith.constant 1 : i32
    %8 = arith.cmpi eq, %arg0, %c1_i32 : i32
    %9 = arith.extui %8 : i1 to i32
    %c0_i32_13 = arith.constant 0 : i32
    %10 = arith.cmpi ne, %9, %c0_i32_13 : i32
    scf.if %10 {
      %c0_15 = arith.constant 0 : index
      %c0_16 = arith.constant 0 : index
      %c0_17 = arith.constant 0 : index
      %14 = vector.load %arg7[%c0_15, %c0_16, %c0_17] : memref<1x8x1xf32, #tpu.memory_space<vmem>>, vector<1x8x1xf32>
      %cst = arith.constant 0.001953125 : f32
      %15 = vector.broadcast %cst : f32 to vector<1x8x1xf32>
      %16 = arith.mulf %14, %15 : vector<1x8x1xf32>
      %c0_18 = arith.constant 0 : index
      %c0_19 = arith.constant 0 : index
      %c0_20 = arith.constant 0 : index
      %17 = vector.load %arg8[%c0_18, %c0_19, %c0_20] : memref<1x8x1xf32, #tpu.memory_space<vmem>>, vector<1x8x1xf32>
      %cst_21 = arith.constant 0.001953125 : f32
      %18 = vector.broadcast %cst_21 : f32 to vector<1x8x1xf32>
      %19 = arith.mulf %17, %18 : vector<1x8x1xf32>
      %20 = arith.mulf %16, %16 : vector<1x8x1xf32>
      %21 = arith.subf %19, %20 : vector<1x8x1xf32>
      %cst_22 = arith.constant 0.000000e+00 : f32
      %22 = vector.broadcast %cst_22 : f32 to vector<1x8x1xf32>
      %23 = arith.maximumf %21, %22 : vector<1x8x1xf32>
      %cst_23 = arith.constant 9.99999974E-6 : f32
      %24 = vector.broadcast %cst_23 : f32 to vector<1x8x1xf32>
      %25 = arith.addf %23, %24 : vector<1x8x1xf32>
      %26 = math.rsqrt %25 : vector<1x8x1xf32>
      %27 = arith.mulf %0, %26 : vector<1x8x1xf32>
      %28 = arith.mulf %16, %27 : vector<1x8x1xf32>
      %29 = arith.subf %1, %28 : vector<1x8x1xf32>
      %30 = vector.shape_cast %27 : vector<1x8x1xf32> to vector<8x1xf32>
      %31 = vector.broadcast %30 : vector<8x1xf32> to vector<8x4xf32>
      %32 = arith.mulf %3, %31 : vector<8x4xf32>
      %33 = vector.extract_strided_slice %32 {offsets = [0, 0], sizes = [8, 1], strides = [1, 1]} : vector<8x4xf32> to vector<8x1xf32>
      %34 = vector.shape_cast %33 : vector<8x1xf32> to vector<1x8x1xf32>
      %35 = vector.extract_strided_slice %2 {offsets = [0, 0, 0], sizes = [2, 1, 256], strides = [1, 1, 1]} : vector<2x4x256xf32> to vector<2x1x256xf32>
      %36 = vector.broadcast %34 : vector<1x8x1xf32> to vector<2x8x256xf32>
      %37 = vector.broadcast %35 : vector<2x1x256xf32> to vector<2x8x256xf32>
      %38 = arith.mulf %36, %37 : vector<2x8x256xf32>
      %39 = vector.extract_strided_slice %32 {offsets = [0, 1], sizes = [8, 1], strides = [1, 1]} : vector<8x4xf32> to vector<8x1xf32>
      %40 = vector.shape_cast %39 : vector<8x1xf32> to vector<1x8x1xf32>
      %41 = vector.extract_strided_slice %2 {offsets = [0, 1, 0], sizes = [2, 1, 256], strides = [1, 1, 1]} : vector<2x4x256xf32> to vector<2x1x256xf32>
      %42 = vector.broadcast %40 : vector<1x8x1xf32> to vector<2x8x256xf32>
      %43 = vector.broadcast %41 : vector<2x1x256xf32> to vector<2x8x256xf32>
      %44 = arith.mulf %42, %43 : vector<2x8x256xf32>
      %45 = arith.addf %38, %44 : vector<2x8x256xf32>
      %46 = vector.extract_strided_slice %32 {offsets = [0, 2], sizes = [8, 1], strides = [1, 1]} : vector<8x4xf32> to vector<8x1xf32>
      %47 = vector.shape_cast %46 : vector<8x1xf32> to vector<1x8x1xf32>
      %48 = vector.extract_strided_slice %2 {offsets = [0, 2, 0], sizes = [2, 1, 256], strides = [1, 1, 1]} : vector<2x4x256xf32> to vector<2x1x256xf32>
      %49 = vector.broadcast %47 : vector<1x8x1xf32> to vector<2x8x256xf32>
      %50 = vector.broadcast %48 : vector<2x1x256xf32> to vector<2x8x256xf32>
      %51 = arith.mulf %49, %50 : vector<2x8x256xf32>
      %52 = arith.addf %45, %51 : vector<2x8x256xf32>
      %53 = vector.extract_strided_slice %32 {offsets = [0, 3], sizes = [8, 1], strides = [1, 1]} : vector<8x4xf32> to vector<8x1xf32>
      %54 = vector.shape_cast %53 : vector<8x1xf32> to vector<1x8x1xf32>
      %55 = vector.extract_strided_slice %2 {offsets = [0, 3, 0], sizes = [2, 1, 256], strides = [1, 1, 1]} : vector<2x4x256xf32> to vector<2x1x256xf32>
      %56 = vector.broadcast %54 : vector<1x8x1xf32> to vector<2x8x256xf32>
      %57 = vector.broadcast %55 : vector<2x1x256xf32> to vector<2x8x256xf32>
      %58 = arith.mulf %56, %57 : vector<2x8x256xf32>
      %59 = arith.addf %52, %58 : vector<2x8x256xf32>
      %60 = vector.broadcast %29 : vector<1x8x1xf32> to vector<2x8x256xf32>
      %61 = arith.addf %59, %60 : vector<2x8x256xf32>
      %cst_24 = arith.constant 0.000000e+00 : f32
      %62 = vector.broadcast %cst_24 : f32 to vector<2x8x256xf32>
      %63 = arith.maximumf %61, %62 : vector<2x8x256xf32>
      %64 = vector.extract_strided_slice %4 {offsets = [0, 0], sizes = [8, 1], strides = [1, 1]} : vector<8x8xf32> to vector<8x1xf32>
      %65 = vector.shape_cast %64 : vector<8x1xf32> to vector<1x8x1xf32>
      %66 = vector.extract_strided_slice %63 {offsets = [0, 0, 0], sizes = [2, 1, 256], strides = [1, 1, 1]} : vector<2x8x256xf32> to vector<2x1x256xf32>
      %67 = vector.broadcast %65 : vector<1x8x1xf32> to vector<2x8x256xf32>
      %68 = vector.broadcast %66 : vector<2x1x256xf32> to vector<2x8x256xf32>
      %69 = arith.mulf %67, %68 : vector<2x8x256xf32>
      %70 = vector.extract_strided_slice %4 {offsets = [0, 1], sizes = [8, 1], strides = [1, 1]} : vector<8x8xf32> to vector<8x1xf32>
      %71 = vector.shape_cast %70 : vector<8x1xf32> to vector<1x8x1xf32>
      %72 = vector.extract_strided_slice %63 {offsets = [0, 1, 0], sizes = [2, 1, 256], strides = [1, 1, 1]} : vector<2x8x256xf32> to vector<2x1x256xf32>
      %73 = vector.broadcast %71 : vector<1x8x1xf32> to vector<2x8x256xf32>
      %74 = vector.broadcast %72 : vector<2x1x256xf32> to vector<2x8x256xf32>
      %75 = arith.mulf %73, %74 : vector<2x8x256xf32>
      %76 = arith.addf %69, %75 : vector<2x8x256xf32>
      %77 = vector.extract_strided_slice %4 {offsets = [0, 2], sizes = [8, 1], strides = [1, 1]} : vector<8x8xf32> to vector<8x1xf32>
      %78 = vector.shape_cast %77 : vector<8x1xf32> to vector<1x8x1xf32>
      %79 = vector.extract_strided_slice %63 {offsets = [0, 2, 0], sizes = [2, 1, 256], strides = [1, 1, 1]} : vector<2x8x256xf32> to vector<2x1x256xf32>
      %80 = vector.broadcast %78 : vector<1x8x1xf32> to vector<2x8x256xf32>
      %81 = vector.broadcast %79 : vector<2x1x256xf32> to vector<2x8x256xf32>
      %82 = arith.mulf %80, %81 : vector<2x8x256xf32>
      %83 = arith.addf %76, %82 : vector<2x8x256xf32>
      %84 = vector.extract_strided_slice %4 {offsets = [0, 3], sizes = [8, 1], strides = [1, 1]} : vector<8x8xf32> to vector<8x1xf32>
      %85 = vector.shape_cast %84 : vector<8x1xf32> to vector<1x8x1xf32>
      %86 = vector.extract_strided_slice %63 {offsets = [0, 3, 0], sizes = [2, 1, 256], strides = [1, 1, 1]} : vector<2x8x256xf32> to vector<2x1x256xf32>
      %87 = vector.broadcast %85 : vector<1x8x1xf32> to vector<2x8x256xf32>
      %88 = vector.broadcast %86 : vector<2x1x256xf32> to vector<2x8x256xf32>
      %89 = arith.mulf %87, %88 : vector<2x8x256xf32>
      %90 = arith.addf %83, %89 : vector<2x8x256xf32>
      %91 = vector.extract_strided_slice %4 {offsets = [0, 4], sizes = [8, 1], strides = [1, 1]} : vector<8x8xf32> to vector<8x1xf32>
      %92 = vector.shape_cast %91 : vector<8x1xf32> to vector<1x8x1xf32>
      %93 = vector.extract_strided_slice %63 {offsets = [0, 4, 0], sizes = [2, 1, 256], strides = [1, 1, 1]} : vector<2x8x256xf32> to vector<2x1x256xf32>
      %94 = vector.broadcast %92 : vector<1x8x1xf32> to vector<2x8x256xf32>
      %95 = vector.broadcast %93 : vector<2x1x256xf32> to vector<2x8x256xf32>
      %96 = arith.mulf %94, %95 : vector<2x8x256xf32>
      %97 = arith.addf %90, %96 : vector<2x8x256xf32>
      %98 = vector.extract_strided_slice %4 {offsets = [0, 5], sizes = [8, 1], strides = [1, 1]} : vector<8x8xf32> to vector<8x1xf32>
      %99 = vector.shape_cast %98 : vector<8x1xf32> to vector<1x8x1xf32>
      %100 = vector.extract_strided_slice %63 {offsets = [0, 5, 0], sizes = [2, 1, 256], strides = [1, 1, 1]} : vector<2x8x256xf32> to vector<2x1x256xf32>
      %101 = vector.broadcast %99 : vector<1x8x1xf32> to vector<2x8x256xf32>
      %102 = vector.broadcast %100 : vector<2x1x256xf32> to vector<2x8x256xf32>
      %103 = arith.mulf %101, %102 : vector<2x8x256xf32>
      %104 = arith.addf %97, %103 : vector<2x8x256xf32>
      %105 = vector.extract_strided_slice %4 {offsets = [0, 6], sizes = [8, 1], strides = [1, 1]} : vector<8x8xf32> to vector<8x1xf32>
      %106 = vector.shape_cast %105 : vector<8x1xf32> to vector<1x8x1xf32>
      %107 = vector.extract_strided_slice %63 {offsets = [0, 6, 0], sizes = [2, 1, 256], strides = [1, 1, 1]} : vector<2x8x256xf32> to vector<2x1x256xf32>
      %108 = vector.broadcast %106 : vector<1x8x1xf32> to vector<2x8x256xf32>
      %109 = vector.broadcast %107 : vector<2x1x256xf32> to vector<2x8x256xf32>
      %110 = arith.mulf %108, %109 : vector<2x8x256xf32>
      %111 = arith.addf %104, %110 : vector<2x8x256xf32>
      %112 = vector.extract_strided_slice %4 {offsets = [0, 7], sizes = [8, 1], strides = [1, 1]} : vector<8x8xf32> to vector<8x1xf32>
      %113 = vector.shape_cast %112 : vector<8x1xf32> to vector<1x8x1xf32>
      %114 = vector.extract_strided_slice %63 {offsets = [0, 7, 0], sizes = [2, 1, 256], strides = [1, 1, 1]} : vector<2x8x256xf32> to vector<2x1x256xf32>
      %115 = vector.broadcast %113 : vector<1x8x1xf32> to vector<2x8x256xf32>
      %116 = vector.broadcast %114 : vector<2x1x256xf32> to vector<2x8x256xf32>
      %117 = arith.mulf %115, %116 : vector<2x8x256xf32>
      %118 = arith.addf %111, %117 : vector<2x8x256xf32>
      %c0_25 = arith.constant 0 : index
      %c0_26 = arith.constant 0 : index
      %c0_27 = arith.constant 0 : index
      %119 = vector.load %arg9[%c0_25, %c0_26, %c0_27] : memref<1x8x1xf32, #tpu.memory_space<vmem>>, vector<1x8x1xf32>
      %cst_28 = arith.constant dense<0.000000e+00> : vector<2x8xf32>
      %120 = vector.multi_reduction <add>, %118, %cst_28 [2] : vector<2x8x256xf32> to vector<2x8xf32>
      %121 = vector.shape_cast %120 : vector<2x8xf32> to vector<2x8x1xf32>
      %cst_29 = arith.constant dense<0.000000e+00> : vector<8x1xf32>
      %122 = vector.multi_reduction <add>, %121, %cst_29 [0] : vector<2x8x1xf32> to vector<8x1xf32>
      %123 = vector.shape_cast %122 : vector<8x1xf32> to vector<1x8x1xf32>
      %124 = arith.addf %119, %123 : vector<1x8x1xf32>
      %c0_30 = arith.constant 0 : index
      %c0_31 = arith.constant 0 : index
      %c0_32 = arith.constant 0 : index
      %125 = vector.load %arg9[%c0_30, %c0_31, %c0_32] : memref<1x8x1xf32, #tpu.memory_space<vmem>>, vector<1x8x1xf32>
      tpu.vector_store %arg9[%c0_30, %c0_31, %c0_32], %124 {strides = array<i32>} : memref<1x8x1xf32, #tpu.memory_space<vmem>>, vector<1x8x1xf32>,
      %c0_33 = arith.constant 0 : index
      %c0_34 = arith.constant 0 : index
      %c0_35 = arith.constant 0 : index
      %126 = vector.load %arg10[%c0_33, %c0_34, %c0_35] : memref<1x8x1xf32, #tpu.memory_space<vmem>>, vector<1x8x1xf32>
      %127 = arith.mulf %118, %118 : vector<2x8x256xf32>
      %cst_36 = arith.constant dense<0.000000e+00> : vector<2x8xf32>
      %128 = vector.multi_reduction <add>, %127, %cst_36 [2] : vector<2x8x256xf32> to vector<2x8xf32>
      %129 = vector.shape_cast %128 : vector<2x8xf32> to vector<2x8x1xf32>
      %cst_37 = arith.constant dense<0.000000e+00> : vector<8x1xf32>
      %130 = vector.multi_reduction <add>, %129, %cst_37 [0] : vector<2x8x1xf32> to vector<8x1xf32>
      %131 = vector.shape_cast %130 : vector<8x1xf32> to vector<1x8x1xf32>
      %132 = arith.addf %126, %131 : vector<1x8x1xf32>
      %c0_38 = arith.constant 0 : index
      %c0_39 = arith.constant 0 : index
      %c0_40 = arith.constant 0 : index
      %133 = vector.load %arg10[%c0_38, %c0_39, %c0_40] : memref<1x8x1xf32, #tpu.memory_space<vmem>>, vector<1x8x1xf32>
      tpu.vector_store %arg10[%c0_38, %c0_39, %c0_40], %132 {strides = array<i32>} : memref<1x8x1xf32, #tpu.memory_space<vmem>>, vector<1x8x1xf32>,
    } else {
    }
    %c2_i32 = arith.constant 2 : i32
    %11 = arith.cmpi eq, %arg0, %c2_i32 : i32
    %12 = arith.extui %11 : i1 to i32
    %c0_i32_14 = arith.constant 0 : i32
    %13 = arith.cmpi ne, %12, %c0_i32_14 : i32
    scf.if %13 {
      %c0_15 = arith.constant 0 : index
      %c0_16 = arith.constant 0 : index
      %c0_17 = arith.constant 0 : index
      %14 = vector.load %arg7[%c0_15, %c0_16, %c0_17] : memref<1x8x1xf32, #tpu.memory_space<vmem>>, vector<1x8x1xf32>
      %cst = arith.constant 0.001953125 : f32
      %15 = vector.broadcast %cst : f32 to vector<1x8x1xf32>
      %16 = arith.mulf %14, %15 : vector<1x8x1xf32>
      %c0_18 = arith.constant 0 : index
      %c0_19 = arith.constant 0 : index
      %c0_20 = arith.constant 0 : index
      %17 = vector.load %arg8[%c0_18, %c0_19, %c0_20] : memref<1x8x1xf32, #tpu.memory_space<vmem>>, vector<1x8x1xf32>
      %cst_21 = arith.constant 0.001953125 : f32
      %18 = vector.broadcast %cst_21 : f32 to vector<1x8x1xf32>
      %19 = arith.mulf %17, %18 : vector<1x8x1xf32>
      %20 = arith.mulf %16, %16 : vector<1x8x1xf32>
      %21 = arith.subf %19, %20 : vector<1x8x1xf32>
      %cst_22 = arith.constant 0.000000e+00 : f32
      %22 = vector.broadcast %cst_22 : f32 to vector<1x8x1xf32>
      %23 = arith.maximumf %21, %22 : vector<1x8x1xf32>
      %cst_23 = arith.constant 9.99999974E-6 : f32
      %24 = vector.broadcast %cst_23 : f32 to vector<1x8x1xf32>
      %25 = arith.addf %23, %24 : vector<1x8x1xf32>
      %26 = math.rsqrt %25 : vector<1x8x1xf32>
      %27 = arith.mulf %0, %26 : vector<1x8x1xf32>
      %28 = arith.mulf %16, %27 : vector<1x8x1xf32>
      %29 = arith.subf %1, %28 : vector<1x8x1xf32>
      %30 = vector.shape_cast %27 : vector<1x8x1xf32> to vector<8x1xf32>
      %31 = vector.broadcast %30 : vector<8x1xf32> to vector<8x4xf32>
      %32 = arith.mulf %3, %31 : vector<8x4xf32>
      %33 = vector.extract_strided_slice %32 {offsets = [0, 0], sizes = [8, 1], strides = [1, 1]} : vector<8x4xf32> to vector<8x1xf32>
      %34 = vector.shape_cast %33 : vector<8x1xf32> to vector<1x8x1xf32>
      %35 = vector.extract_strided_slice %2 {offsets = [0, 0, 0], sizes = [2, 1, 256], strides = [1, 1, 1]} : vector<2x4x256xf32> to vector<2x1x256xf32>
      %36 = vector.broadcast %34 : vector<1x8x1xf32> to vector<2x8x256xf32>
      %37 = vector.broadcast %35 : vector<2x1x256xf32> to vector<2x8x256xf32>
      %38 = arith.mulf %36, %37 : vector<2x8x256xf32>
      %39 = vector.extract_strided_slice %32 {offsets = [0, 1], sizes = [8, 1], strides = [1, 1]} : vector<8x4xf32> to vector<8x1xf32>
      %40 = vector.shape_cast %39 : vector<8x1xf32> to vector<1x8x1xf32>
      %41 = vector.extract_strided_slice %2 {offsets = [0, 1, 0], sizes = [2, 1, 256], strides = [1, 1, 1]} : vector<2x4x256xf32> to vector<2x1x256xf32>
      %42 = vector.broadcast %40 : vector<1x8x1xf32> to vector<2x8x256xf32>
      %43 = vector.broadcast %41 : vector<2x1x256xf32> to vector<2x8x256xf32>
      %44 = arith.mulf %42, %43 : vector<2x8x256xf32>
      %45 = arith.addf %38, %44 : vector<2x8x256xf32>
      %46 = vector.extract_strided_slice %32 {offsets = [0, 2], sizes = [8, 1], strides = [1, 1]} : vector<8x4xf32> to vector<8x1xf32>
      %47 = vector.shape_cast %46 : vector<8x1xf32> to vector<1x8x1xf32>
      %48 = vector.extract_strided_slice %2 {offsets = [0, 2, 0], sizes = [2, 1, 256], strides = [1, 1, 1]} : vector<2x4x256xf32> to vector<2x1x256xf32>
      %49 = vector.broadcast %47 : vector<1x8x1xf32> to vector<2x8x256xf32>
      %50 = vector.broadcast %48 : vector<2x1x256xf32> to vector<2x8x256xf32>
      %51 = arith.mulf %49, %50 : vector<2x8x256xf32>
      %52 = arith.addf %45, %51 : vector<2x8x256xf32>
      %53 = vector.extract_strided_slice %32 {offsets = [0, 3], sizes = [8, 1], strides = [1, 1]} : vector<8x4xf32> to vector<8x1xf32>
      %54 = vector.shape_cast %53 : vector<8x1xf32> to vector<1x8x1xf32>
      %55 = vector.extract_strided_slice %2 {offsets = [0, 3, 0], sizes = [2, 1, 256], strides = [1, 1, 1]} : vector<2x4x256xf32> to vector<2x1x256xf32>
      %56 = vector.broadcast %54 : vector<1x8x1xf32> to vector<2x8x256xf32>
      %57 = vector.broadcast %55 : vector<2x1x256xf32> to vector<2x8x256xf32>
      %58 = arith.mulf %56, %57 : vector<2x8x256xf32>
      %59 = arith.addf %52, %58 : vector<2x8x256xf32>
      %60 = vector.broadcast %29 : vector<1x8x1xf32> to vector<2x8x256xf32>
      %61 = arith.addf %59, %60 : vector<2x8x256xf32>
      %cst_24 = arith.constant 0.000000e+00 : f32
      %62 = vector.broadcast %cst_24 : f32 to vector<2x8x256xf32>
      %63 = arith.maximumf %61, %62 : vector<2x8x256xf32>
      %c0_25 = arith.constant 0 : index
      %c0_26 = arith.constant 0 : index
      %c0_27 = arith.constant 0 : index
      %64 = vector.load %arg9[%c0_25, %c0_26, %c0_27] : memref<1x8x1xf32, #tpu.memory_space<vmem>>, vector<1x8x1xf32>
      %cst_28 = arith.constant 0.001953125 : f32
      %65 = vector.broadcast %cst_28 : f32 to vector<1x8x1xf32>
      %66 = arith.mulf %64, %65 : vector<1x8x1xf32>
      %c0_29 = arith.constant 0 : index
      %c0_30 = arith.constant 0 : index
      %c0_31 = arith.constant 0 : index
      %67 = vector.load %arg10[%c0_29, %c0_30, %c0_31] : memref<1x8x1xf32, #tpu.memory_space<vmem>>, vector<1x8x1xf32>
      %cst_32 = arith.constant 0.001953125 : f32
      %68 = vector.broadcast %cst_32 : f32 to vector<1x8x1xf32>
      %69 = arith.mulf %67, %68 : vector<1x8x1xf32>
      %70 = arith.mulf %66, %66 : vector<1x8x1xf32>
      %71 = arith.subf %69, %70 : vector<1x8x1xf32>
      %cst_33 = arith.constant 0.000000e+00 : f32
      %72 = vector.broadcast %cst_33 : f32 to vector<1x8x1xf32>
      %73 = arith.maximumf %71, %72 : vector<1x8x1xf32>
      %cst_34 = arith.constant 9.99999974E-6 : f32
      %74 = vector.broadcast %cst_34 : f32 to vector<1x8x1xf32>
      %75 = arith.addf %73, %74 : vector<1x8x1xf32>
      %76 = math.rsqrt %75 : vector<1x8x1xf32>
      %77 = arith.mulf %0, %76 : vector<1x8x1xf32>
      %78 = arith.mulf %66, %77 : vector<1x8x1xf32>
      %79 = arith.subf %1, %78 : vector<1x8x1xf32>
      %80 = vector.shape_cast %77 : vector<1x8x1xf32> to vector<8x1xf32>
      %81 = vector.broadcast %80 : vector<8x1xf32> to vector<8x8xf32>
      %82 = arith.mulf %4, %81 : vector<8x8xf32>
      %83 = vector.extract_strided_slice %82 {offsets = [0, 0], sizes = [8, 1], strides = [1, 1]} : vector<8x8xf32> to vector<8x1xf32>
      %84 = vector.shape_cast %83 : vector<8x1xf32> to vector<1x8x1xf32>
      %85 = vector.extract_strided_slice %63 {offsets = [0, 0, 0], sizes = [2, 1, 256], strides = [1, 1, 1]} : vector<2x8x256xf32> to vector<2x1x256xf32>
      %86 = vector.broadcast %84 : vector<1x8x1xf32> to vector<2x8x256xf32>
      %87 = vector.broadcast %85 : vector<2x1x256xf32> to vector<2x8x256xf32>
      %88 = arith.mulf %86, %87 : vector<2x8x256xf32>
      %89 = vector.extract_strided_slice %82 {offsets = [0, 1], sizes = [8, 1], strides = [1, 1]} : vector<8x8xf32> to vector<8x1xf32>
      %90 = vector.shape_cast %89 : vector<8x1xf32> to vector<1x8x1xf32>
      %91 = vector.extract_strided_slice %63 {offsets = [0, 1, 0], sizes = [2, 1, 256], strides = [1, 1, 1]} : vector<2x8x256xf32> to vector<2x1x256xf32>
      %92 = vector.broadcast %90 : vector<1x8x1xf32> to vector<2x8x256xf32>
      %93 = vector.broadcast %91 : vector<2x1x256xf32> to vector<2x8x256xf32>
      %94 = arith.mulf %92, %93 : vector<2x8x256xf32>
      %95 = arith.addf %88, %94 : vector<2x8x256xf32>
      %96 = vector.extract_strided_slice %82 {offsets = [0, 2], sizes = [8, 1], strides = [1, 1]} : vector<8x8xf32> to vector<8x1xf32>
      %97 = vector.shape_cast %96 : vector<8x1xf32> to vector<1x8x1xf32>
      %98 = vector.extract_strided_slice %63 {offsets = [0, 2, 0], sizes = [2, 1, 256], strides = [1, 1, 1]} : vector<2x8x256xf32> to vector<2x1x256xf32>
      %99 = vector.broadcast %97 : vector<1x8x1xf32> to vector<2x8x256xf32>
      %100 = vector.broadcast %98 : vector<2x1x256xf32> to vector<2x8x256xf32>
      %101 = arith.mulf %99, %100 : vector<2x8x256xf32>
      %102 = arith.addf %95, %101 : vector<2x8x256xf32>
      %103 = vector.extract_strided_slice %82 {offsets = [0, 3], sizes = [8, 1], strides = [1, 1]} : vector<8x8xf32> to vector<8x1xf32>
      %104 = vector.shape_cast %103 : vector<8x1xf32> to vector<1x8x1xf32>
      %105 = vector.extract_strided_slice %63 {offsets = [0, 3, 0], sizes = [2, 1, 256], strides = [1, 1, 1]} : vector<2x8x256xf32> to vector<2x1x256xf32>
      %106 = vector.broadcast %104 : vector<1x8x1xf32> to vector<2x8x256xf32>
      %107 = vector.broadcast %105 : vector<2x1x256xf32> to vector<2x8x256xf32>
      %108 = arith.mulf %106, %107 : vector<2x8x256xf32>
      %109 = arith.addf %102, %108 : vector<2x8x256xf32>
      %110 = vector.extract_strided_slice %82 {offsets = [0, 4], sizes = [8, 1], strides = [1, 1]} : vector<8x8xf32> to vector<8x1xf32>
      %111 = vector.shape_cast %110 : vector<8x1xf32> to vector<1x8x1xf32>
      %112 = vector.extract_strided_slice %63 {offsets = [0, 4, 0], sizes = [2, 1, 256], strides = [1, 1, 1]} : vector<2x8x256xf32> to vector<2x1x256xf32>
      %113 = vector.broadcast %111 : vector<1x8x1xf32> to vector<2x8x256xf32>
      %114 = vector.broadcast %112 : vector<2x1x256xf32> to vector<2x8x256xf32>
      %115 = arith.mulf %113, %114 : vector<2x8x256xf32>
      %116 = arith.addf %109, %115 : vector<2x8x256xf32>
      %117 = vector.extract_strided_slice %82 {offsets = [0, 5], sizes = [8, 1], strides = [1, 1]} : vector<8x8xf32> to vector<8x1xf32>
      %118 = vector.shape_cast %117 : vector<8x1xf32> to vector<1x8x1xf32>
      %119 = vector.extract_strided_slice %63 {offsets = [0, 5, 0], sizes = [2, 1, 256], strides = [1, 1, 1]} : vector<2x8x256xf32> to vector<2x1x256xf32>
      %120 = vector.broadcast %118 : vector<1x8x1xf32> to vector<2x8x256xf32>
      %121 = vector.broadcast %119 : vector<2x1x256xf32> to vector<2x8x256xf32>
      %122 = arith.mulf %120, %121 : vector<2x8x256xf32>
      %123 = arith.addf %116, %122 : vector<2x8x256xf32>
      %124 = vector.extract_strided_slice %82 {offsets = [0, 6], sizes = [8, 1], strides = [1, 1]} : vector<8x8xf32> to vector<8x1xf32>
      %125 = vector.shape_cast %124 : vector<8x1xf32> to vector<1x8x1xf32>
      %126 = vector.extract_strided_slice %63 {offsets = [0, 6, 0], sizes = [2, 1, 256], strides = [1, 1, 1]} : vector<2x8x256xf32> to vector<2x1x256xf32>
      %127 = vector.broadcast %125 : vector<1x8x1xf32> to vector<2x8x256xf32>
      %128 = vector.broadcast %126 : vector<2x1x256xf32> to vector<2x8x256xf32>
      %129 = arith.mulf %127, %128 : vector<2x8x256xf32>
      %130 = arith.addf %123, %129 : vector<2x8x256xf32>
      %131 = vector.extract_strided_slice %82 {offsets = [0, 7], sizes = [8, 1], strides = [1, 1]} : vector<8x8xf32> to vector<8x1xf32>
      %132 = vector.shape_cast %131 : vector<8x1xf32> to vector<1x8x1xf32>
      %133 = vector.extract_strided_slice %63 {offsets = [0, 7, 0], sizes = [2, 1, 256], strides = [1, 1, 1]} : vector<2x8x256xf32> to vector<2x1x256xf32>
      %134 = vector.broadcast %132 : vector<1x8x1xf32> to vector<2x8x256xf32>
      %135 = vector.broadcast %133 : vector<2x1x256xf32> to vector<2x8x256xf32>
      %136 = arith.mulf %134, %135 : vector<2x8x256xf32>
      %137 = arith.addf %130, %136 : vector<2x8x256xf32>
      %138 = vector.broadcast %79 : vector<1x8x1xf32> to vector<2x8x256xf32>
      %139 = arith.addf %137, %138 : vector<2x8x256xf32>
      %cst_35 = arith.constant 0.000000e+00 : f32
      %140 = vector.broadcast %cst_35 : f32 to vector<2x8x256xf32>
      %141 = arith.maximumf %139, %140 : vector<2x8x256xf32>
      %c0_36 = arith.constant 0 : index
      %c0_37 = arith.constant 0 : index
      %c0_38 = arith.constant 0 : index
      %142 = vector.load %arg6[%c0_36, %c0_37, %c0_38] : memref<2x8x256xf32, #tpu.memory_space<vmem>>, vector<2x8x256xf32>
      tpu.vector_store %arg6[%c0_36, %c0_37, %c0_38], %141 {strides = array<i32>} : memref<2x8x256xf32, #tpu.memory_space<vmem>>, vector<2x8x256xf32>,
    } else {
    }
    return
  }
  func.func @transform_0(%arg0: i32) -> (i32, i32, i32) {
    %c0_i32 = arith.constant 0 : i32
    %c0_i32_0 = arith.constant 0 : i32
    %c0_i32_1 = arith.constant 0 : i32
    %c0_i32_2 = arith.constant 0 : i32
    return %c0_i32, %c0_i32_0, %c0_i32_1 : i32, i32, i32
  }
  func.func @transform_1(%arg0: i32) -> (i32, i32) {
    %c0_i32 = arith.constant 0 : i32
    %c0_i32_0 = arith.constant 0 : i32
    %c0_i32_1 = arith.constant 0 : i32
    return %c0_i32, %c0_i32_0 : i32, i32
  }
  func.func @transform_2(%arg0: i32) -> (i32, i32) {
    %c0_i32 = arith.constant 0 : i32
    %c0_i32_0 = arith.constant 0 : i32
    %c0_i32_1 = arith.constant 0 : i32
    return %c0_i32, %c0_i32_0 : i32, i32
  }
  func.func @transform_3(%arg0: i32) -> (i32, i32, i32) {
    %c0_i32 = arith.constant 0 : i32
    %c0_i32_0 = arith.constant 0 : i32
    %c0_i32_1 = arith.constant 0 : i32
    %c0_i32_2 = arith.constant 0 : i32
    return %c0_i32, %c0_i32_0, %c0_i32_1 : i32, i32, i32
  }
  func.func @transform_4(%arg0: i32) -> (i32, i32, i32) {
    %c0_i32 = arith.constant 0 : i32
    %c0_i32_0 = arith.constant 0 : i32
    %c0_i32_1 = arith.constant 0 : i32
    %c0_i32_2 = arith.constant 0 : i32
    return %c0_i32, %c0_i32_0, %c0_i32_1 : i32, i32, i32
  }
  func.func @transform_5(%arg0: i32) -> (i32, i32, i32) {
    %c0_i32 = arith.constant 0 : i32
    %c0_i32_0 = arith.constant 0 : i32
    %c0_i32_1 = arith.constant 0 : i32
    %c0_i32_2 = arith.constant 0 : i32
    return %c0_i32, %c0_i32_0, %c0_i32_1 : i32, i32, i32
  }
}

</mosaic_0001>

<bundles_post_ra>
// kernel: tpu_custom_call.1
= control target key start
LH: loop header
LB: loop body
LE: loop exit
PB: predicated region body
PF: predicated region fallthrough
CT: control target
= control target key end

     0   :  { %10 = vsyncpa [#allocation7], 0  ;;  %s1588_s18 = smov 0   ;;  %s1967_s0 = inlined_call_operand.vmem [shape: f32[2,4,256], index: 0, kind: input, shape index: {}]   ;;  %s1968_s1 = inlined_call_operand.vmem [shape: f32[8,4], index: 1, kind: input, shape index: {}]   ;;  %s1969_s2 = inlined_call_operand.vmem [shape: f32[8,8], index: 2, kind: input, shape index: {}]   ;;  %s1970_s3 = inlined_call_operand.vmem [shape: f32[1,8,1], index: 3, kind: input, shape index: {}]   ;;  %s1971_s4 = inlined_call_operand.vmem [shape: f32[1,8,1], index: 4, kind: input, shape index: {}]   ;;  %s1972_s5 = inlined_call_operand.hbm [shape: f32[2,8,256], index: 5, kind: output, shape index: {}]  }
   0x1 LB: > { %s1594_s19 = sadd.s32 4294967295, %s1532_s18   ;;  %p1413_p0 = scmp.ge.s32.totalorder %s1532_s18, 1  ;;  %s1532_s18 = sphi %s1588_s18, %s16_s18  }
   0x2   : > { %p173_p1 = scmp.lt.s32.totalorder %s1532_s18, 4 }
   0x4   : > { %p174_p2 = pnand %p1413_p0, %p173_p1 }
   0x5   : > { %p1414_p3 = scmp.ne.s32.totalorder (!%p174_p2), %s1594_s19, 0 }
   0x6   : > { %177 = sbr.rel (%p174_p2) target bundleno = 1128 (0x468), region = 40 }
   0xb   : > { %v1601_v0 = vld [vmem:[%s1970_s3] sm:$0xff]  ;;  %v1616_v3 = vld [vmem:[%s1967_s0 + $0x8] sm:$0xff]  ;;  %200 = sbr.rel (%p1414_p3) target bundleno = 304 (0x130), region = 44 }
   0xc   : > { %v1606_v1 = vld [vmem:[%s1971_s4] sm:$0xff] }
   0xd   : > { %v1611_v2 = vld [vmem:[%s1967_s0] sm:$0xff] }
   0xe   : > { %v1621_v4 = vld [vmem:[%s1968_s1] sm:$0xff] }
   0xf   : > { %v1626_v5 = vld [vmem:[%s1969_s2] sm:$0xff] }
  0x10   : > { %v1534_v6 = vmov 0   ;;  %v1535_v7 = vmov 2   ;;  %v1536_v8 = vmov 1   ;;  %v1537_v9 = vmov 3  }
  0x11   : > { %1459 = vset.pattern.permute.xlu0 %v1534_v6  ;;  %1461 = vset.pattern.permute.xlu1 %v1535_v7  ;;  %v213_v10 = vlaneseq  ;;  %vm201_vm0 = vcmask 7168  }
  0x12   : > { %208 = vperm.xlu0 %1459, %v1621_v4   ;;  %302 = vperm.xlu1 %1461, %v1621_v4  }
  0x13   : > { %v214_v11 = vshrl.u32 %v213_v10, 7 }
  0x15   : > { %v215_v12 = vsub.s32 0, %v214_v11  ;;  %v219_v13 = vsub.s32 4, %v214_v11  ;;  %v307_v14 = vsub.s32 2, %v214_v11  ;;  %v311_v15 = vsub.s32 6, %v214_v11 }
  0x16   : > { %1460 = vset.pattern.permute.xlu0 %v1536_v8  ;;  %1462 = vset.pattern.permute.xlu1 %v1537_v9  ;;  %v259_v16 = vsub.s32 1, %v214_v11  ;;  %v263_v17 = vsub.s32 5, %v214_v11  ;;  %v355_v18 = vsub.s32 3, %v214_v11  ;;  %v359_v19 = vsub.s32 7, %v214_v11 }
  0x17   : > { %254 = vperm.xlu0 %1460, %v1621_v4   ;;  %350 = vperm.xlu1 %1462, %v1621_v4   ;;  %v216_v20 = vrot.slane %v1611_v2, %v215_v12  ;;  %v220_v21 = vrot.slane %v1611_v2, %v219_v13  ;;  %v224_v22 = vrot.slane %v1616_v3, %v215_v12 }
  0x18   : > { %v228_v23 = vrot.slane %v1616_v3, %v219_v13  ;;  %v308_v24 = vrot.slane %v1611_v2, %v307_v14  ;;  %v312_v25 = vrot.slane %v1611_v2, %v311_v15  ;;  %v316_v26 = vrot.slane %v1616_v3, %v307_v14 }
  0x19   : > { %v320_v27 = vrot.slane %v1616_v3, %v311_v15  ;;  %v260_v28 = vrot.slane %v1611_v2, %v259_v16  ;;  %v264_v29 = vrot.slane %v1611_v2, %v263_v17  ;;  %v268_v30 = vrot.slane %v1616_v3, %v259_v16 }
  0x1a   : > { %v272_v31 = vrot.slane %v1616_v3, %v263_v17  ;;  %v364_v32 = vrot.slane %v1616_v3, %v355_v18  ;;  %v368_v33 = vrot.slane %v1616_v3, %v359_v19  ;;  %v356_v34 = vrot.slane %v1611_v2, %v355_v18 }
  0x1b   : > { %1463 = vset.pattern.permute.xlu0 %v1537_v9  ;;  %v360_v35 = vrot.slane %v1611_v2, %v359_v19  ;;  %v236_v36 = vrot.slane %v216_v20, %v215_v12  ;;  %v240_v37 = vrot.slane %v220_v21, %v215_v12  ;;  %v244_v38 = vrot.slane %v224_v22, %v215_v12 }
  0x1c   : > { %v248_v39 = vrot.slane %v228_v23, %v215_v12  ;;  %v328_v42 = vrot.slane %v308_v24, %v307_v14  ;;  %v332_v43 = vrot.slane %v312_v25, %v307_v14  ;;  %v336_v44 = vrot.slane %v316_v26, %v307_v14 }
  0x1d   : > { %v340_v45 = vrot.slane %v320_v27, %v307_v14  ;;  %v280_v46 = vrot.slane %v260_v28, %v259_v16  ;;  %v284_v47 = vrot.slane %v264_v29, %v259_v16  ;;  %v288_v48 = vrot.slane %v268_v30, %v259_v16 }
  0x1e   : > { %v292_v49 = vrot.slane %v272_v31, %v259_v16  ;;  %v384_v50 = vrot.slane %v364_v32, %v355_v18  ;;  %v388_v51 = vrot.slane %v368_v33, %v355_v18  ;;  %v376_v52 = vrot.slane %v356_v34, %v355_v18 }
  0x1f   : > { %v380_v53 = vrot.slane %v360_v35, %v355_v18  ;;  %v1538_v34 = vmov 0.0  }
  0x20   : > { %202 = vst.msk [vmem:[#allocation2] sm:$0xff] %vm201_vm0, %v1538_v34  ;;  %204 = vst.msk [vmem:[#allocation4] sm:$0xff] %vm201_vm0, %v1538_v34 }
  0x21   : > { %205 = vst.msk [vmem:[#allocation5] sm:$0xff] %vm201_vm0, %v1538_v34  ;;  %203 = vst.msk [vmem:[#allocation3] sm:$0xff] %vm201_vm0, %v1538_v34 }
  0x8d   : > { %v209_v40 = vpop.permute.xlu0 %208  ;;  %v303_v41 = vpop.permute.xlu1 %302 }
  0x8e   : > { %v249_v54 = vmul.f32 %v236_v36, %v209_v40  ;;  %v250_v55 = vmul.f32 %v240_v37, %v209_v40  ;;  %v251_v56 = vmul.f32 %v244_v38, %v209_v40  ;;  %v252_v57 = vmul.f32 %v248_v39, %v209_v40  ;;  %v397_v37 = vld [vmem:[#allocation2] sm:$0xff] }
  0x8f   : > { %v341_v58 = vmul.f32 %v328_v42, %v303_v41  ;;  %v342_v59 = vmul.f32 %v332_v43, %v303_v41  ;;  %v343_v60 = vmul.f32 %v336_v44, %v303_v41  ;;  %v344_v61 = vmul.f32 %v340_v45, %v303_v41  ;;  %v407_v42 = vld [vmem:[#allocation3] sm:$0xff] }
  0x92   : > { %v255_v62 = vpop.permute.xlu0 %254  ;;  %v351_v63 = vpop.permute.xlu1 %350 }
  0x93   : > { %v293_v6 = vmul.f32 %v280_v46, %v255_v62  ;;  %v294_v7 = vmul.f32 %v284_v47, %v255_v62  ;;  %v295_v8 = vmul.f32 %v288_v48, %v255_v62  ;;  %v296_v9 = vmul.f32 %v292_v49, %v255_v62 }
  0x94   : > { %v391_v10 = vmul.f32 %v384_v50, %v351_v63  ;;  %v392_v11 = vmul.f32 %v388_v51, %v351_v63  ;;  %v389_v12 = vmul.f32 %v376_v52, %v351_v63  ;;  %v390_v13 = vmul.f32 %v380_v53, %v351_v63 }
  0x95   : > { %v299_v14 = vadd.f32 %v295_v8, %v251_v56  ;;  %v300_v15 = vadd.f32 %v296_v9, %v252_v57  ;;  %v297_v16 = vadd.f32 %v293_v6, %v249_v54  ;;  %v298_v17 = vadd.f32 %v294_v7, %v250_v55 }
  0x97   : > { %v347_v18 = vadd.f32 %v343_v60, %v299_v14  ;;  %v348_v19 = vadd.f32 %v344_v61, %v300_v15  ;;  %v345_v20 = vadd.f32 %v341_v58, %v297_v16  ;;  %v346_v21 = vadd.f32 %v342_v59, %v298_v17 }
  0x99   : > { %v395_v22 = vadd.f32 %v391_v10, %v347_v18  ;;  %v396_v23 = vadd.f32 %v392_v11, %v348_v19  ;;  %v393_v24 = vadd.f32 %v389_v12, %v345_v20  ;;  %v394_v25 = vadd.f32 %v390_v13, %v346_v21 }
  0x9b   : > { %v401_v26 = vadd.f32 %v396_v23, %v395_v22  ;;  %v398_v27 = vadd.f32 %v394_v25, %v393_v24  ;;  %v408_v28 = vmul.f32 %v393_v24, %v393_v24  ;;  %v409_v29 = vmul.f32 %v394_v25, %v394_v25 }
  0x9c   : > { %v410_v30 = vmul.f32 %v395_v22, %v395_v22  ;;  %v411_v31 = vmul.f32 %v396_v23, %v396_v23 }
  0x9d   : > { %402 = vadd.xlane.f32.xlu0 %v401_v26  ;;  %399 = vadd.xlane.f32.xlu1 %v398_v27  ;;  %v412_v32 = vadd.f32 %v409_v29, %v408_v28 }
  0x9e   : > { %v415_v33 = vadd.f32 %v411_v31, %v410_v30 }
  0xa1   : > { %413 = vadd.xlane.f32.xlu0 %v412_v32  ;;  %416 = vadd.xlane.f32.xlu1 %v415_v33 }
 0x126   : > { %v403_v35 = vpop.xlane.xlu0 %402  ;;  %v400_v36 = vpop.xlane.xlu1 %399 }
 0x127   : > { %v404_v38 = vadd.f32 %v403_v35, %v400_v36 }
 0x129   : > { %v405_v39 = vadd.f32 %v404_v38, %v397_v37 }
 0x12a   : > { %v414_v40 = vpop.xlane.xlu0 %413  ;;  %v417_v41 = vpop.xlane.xlu1 %416 }
 0x12b   : > { %406 = vst.msk [vmem:[#allocation2] sm:$0xff] %vm201_vm0, %v405_v39  ;;  %v418_v43 = vadd.f32 %v417_v41, %v414_v40 }
 0x12d   : > { %v419_v44 = vadd.f32 %v418_v43, %v407_v42 }
 0x12f   : > { %420 = vst.msk [vmem:[#allocation3] sm:$0xff] %vm201_vm0, %v419_v44 }
 0x130 PF: > { %p1415_p4 = scmp.ne.s32.totalorder %s1594_s19, 1 }
 0x132   : > { %424 = sbr.rel (%p1415_p4) target bundleno = 777 (0x309), region = 48 }
 0x137   : > { %v425_v45 = vld [vmem:[#allocation2] sm:$0xff]  ;;  %v427_v46 = vld [vmem:[#allocation3] sm:$0xff]  ;;  %v1539_v47 = vmov 0   ;;  %v1540_v55 = vmov 1   ;;  %v1541_v60 = vmov 2   ;;  %v1542_v61 = vmov 3  }
 0x138   : > { %1464 = vset.pattern.permute.xlu0 %v1539_v47  ;;  %v426_v48 = vmul.f32 0.001953125, %v425_v45  ;;  %v428_v49 = vmul.f32 0.001953125, %v427_v46  ;;  %1465 = vset.pattern.permute.xlu1 %v1540_v55  ;;  %v1543_v63 = vmov 4   ;;  %v1544_v6 = vmov 7  }
 0x139   : > { %v1545_v7 = vmov 5   ;;  %v1546_v8 = vmov 6   ;;  %v450_v9 = vlaneseq  ;;  %vm877_vm1 = vcmask 7168  }
 0x13a   : > { %v429_v50 = vmul.f32 %v426_v48, %v426_v48 }
 0x13b   : > { %v451_v10 = vshrl.u32 %v450_v9, 7 }
 0x13c   : > { %v430_v51 = vsub.f32 %v428_v49, %v429_v50 }
 0x13d   : > { %v1667_v11 = vsub.s32 1, %v451_v10  ;;  %v1669_v12 = vsub.s32 5, %v451_v10  ;;  %v1671_v13 = vsub.s32 0, %v451_v10  ;;  %v1673_v14 = vsub.s32 4, %v451_v10 }
 0x13e   : > { %v431_v52 = vmax.f32 %v430_v51, 0.0  ;;  %v1675_v15 = vsub.s32 2, %v451_v10  ;;  %v1677_v16 = vsub.s32 6, %v451_v10  ;;  %v1695_v25 = vsub.s32 3, %v451_v10 }
 0x13f   : > { %v497_v17 = vrot.slane %v1611_v2, %v1667_v11  ;;  %v501_v18 = vrot.slane %v1611_v2, %v1669_v12  ;;  %v505_v19 = vrot.slane %v1616_v3, %v1667_v11  ;;  %v509_v20 = vrot.slane %v1616_v3, %v1669_v12 }
 0x140   : > { %v432_v53 = vadd.f32 1e-05, %v431_v52  ;;  %v453_v21 = vrot.slane %v1611_v2, %v1671_v13  ;;  %v457_v22 = vrot.slane %v1611_v2, %v1673_v14  ;;  %v461_v23 = vrot.slane %v1616_v3, %v1671_v13 }
 0x141   : > { %v465_v24 = vrot.slane %v1616_v3, %v1673_v14  ;;  %v1697_v26 = vsub.s32 7, %v451_v10  ;;  %v545_v27 = vrot.slane %v1611_v2, %v1675_v15  ;;  %v549_v28 = vrot.slane %v1611_v2, %v1677_v16 }
 0x142   : > { %1476 = vrsqrt.f32 %v432_v53  ;;  %v553_v29 = vrot.slane %v1616_v3, %v1675_v15  ;;  %v557_v30 = vrot.slane %v1616_v3, %v1677_v16  ;;  %v517_v31 = vrot.slane %v497_v17, %v1667_v11 }
 0x143   : > { %v521_v32 = vrot.slane %v501_v18, %v1667_v11  ;;  %v525_v33 = vrot.slane %v505_v19, %v1667_v11  ;;  %v529_v34 = vrot.slane %v509_v20, %v1667_v11  ;;  %v473_v35 = vrot.slane %v453_v21, %v1671_v13 }
 0x144   : > { %v477_v36 = vrot.slane %v457_v22, %v1671_v13  ;;  %v481_v37 = vrot.slane %v461_v23, %v1671_v13  ;;  %v485_v38 = vrot.slane %v465_v24, %v1671_v13  ;;  %v593_v39 = vrot.slane %v1611_v2, %v1695_v25 }
 0x145   : > { %v597_v40 = vrot.slane %v1611_v2, %v1697_v26  ;;  %v601_v41 = vrot.slane %v1616_v3, %v1695_v25  ;;  %v605_v42 = vrot.slane %v1616_v3, %v1697_v26  ;;  %v565_v45 = vrot.slane %v545_v27, %v1675_v15 }
 0x146   : > { %v569_v46 = vrot.slane %v549_v28, %v1675_v15 }
 0x14f   : > { %v1477_v54 = vpop.eup %1476 }
 0x150   : > { %v434_v56 = vmul.f32 %v1477_v54, %v1601_v0 }
 0x152   : > { %439 = vperm.xlu0 %1464, %v434_v56   ;;  %v435_v57 = vmul.f32 %v434_v56, %v426_v48  ;;  %v577_v48 = vrot.slane %v557_v30, %v1675_v15 }
 0x154   : > { %v436_v62 = vsub.f32 %v1606_v1, %v435_v57  ;;  %v613_v57 = vrot.slane %v593_v39, %v1695_v25 }
 0x1cd   : > { %v440_v58 = vpop.permute.xlu0 %439 }
 0x1ce   : > { %v442_v59 = vmul.f32 %v440_v58, %v1621_v4  ;;  %v617_v58 = vrot.slane %v597_v40, %v1695_v25 }
 0x1d0   : > { %491 = vperm.xlu1 %1465, %v442_v59   ;;  %445 = vperm.xlu0 %1464, %v442_v59  }
 0x1d4   : > { %1466 = vset.pattern.permute.xlu1 %v1541_v60  ;;  %1468 = vset.pattern.permute.xlu0 %v1542_v61 }
 0x1d5   : > { %539 = vperm.xlu1 %1466, %v442_v59   ;;  %587 = vperm.xlu0 %1468, %v442_v59   ;;  %v621_v59 = vrot.slane %v601_v41, %v1695_v25 }
 0x1d9   : > { %1467 = vset.pattern.permute.xlu1 %v1539_v47  ;;  %1469 = vset.pattern.permute.xlu0 %v1540_v55  ;;  %v573_v47 = vrot.slane %v553_v29, %v1675_v15 }
 0x1da   : > { %673 = vperm.xlu0 %1469, %v1626_v5   ;;  %636 = vperm.xlu1 %1467, %v436_v62  }
 0x1de   : > { %1472 = vset.pattern.permute.xlu0 %v1543_v63  ;;  %649 = vperm.xlu1 %1467, %v1626_v5  }
 0x1df   : > { %757 = vperm.xlu0 %1472, %v1626_v5  }
 0x1e2   : > { %1470 = vset.pattern.permute.xlu1 %v1541_v60  ;;  %v625_v60 = vrot.slane %v605_v42, %v1695_v25 }
 0x1e3   : > { %1475 = vset.pattern.permute.xlu0 %v1544_v6  ;;  %701 = vperm.xlu1 %1470, %v1626_v5  }
 0x1e4   : > { %841 = vperm.xlu0 %1475, %v1626_v5  }
 0x1e7   : > { %1471 = vset.pattern.permute.xlu1 %v1542_v61 }
 0x1e8   : > { %729 = vperm.xlu1 %1471, %v1626_v5  }
 0x1ec   : > { %1473 = vset.pattern.permute.xlu1 %v1545_v7 }
 0x1ed   : > { %785 = vperm.xlu1 %1473, %v1626_v5  }
 0x1f1   : > { %1474 = vset.pattern.permute.xlu1 %v1546_v8 }
 0x1f2   : > { %813 = vperm.xlu1 %1474, %v1626_v5  }
 0x24b   : > { %v492_v43 = vpop.permute.xlu1 %491  ;;  %v446_v44 = vpop.permute.xlu0 %445 }
 0x24c   : > { %v530_v49 = vmul.f32 %v517_v31, %v492_v43  ;;  %v531_v50 = vmul.f32 %v521_v32, %v492_v43  ;;  %v532_v51 = vmul.f32 %v525_v33, %v492_v43  ;;  %v533_v52 = vmul.f32 %v529_v34, %v492_v43 }
 0x24d   : > { %v486_v53 = vmul.f32 %v473_v35, %v446_v44  ;;  %v487_v54 = vmul.f32 %v477_v36, %v446_v44  ;;  %v488_v55 = vmul.f32 %v481_v37, %v446_v44  ;;  %v489_v56 = vmul.f32 %v485_v38, %v446_v44 }
 0x24f   : > { %v534_v61 = vadd.f32 %v530_v49, %v486_v53  ;;  %v535_v62 = vadd.f32 %v531_v50, %v487_v54  ;;  %v536_v63 = vadd.f32 %v532_v51, %v488_v55  ;;  %v537_v6 = vadd.f32 %v533_v52, %v489_v56 }
 0x250   : > { %v540_v7 = vpop.permute.xlu1 %539  ;;  %v588_v8 = vpop.permute.xlu0 %587 }
 0x251   : > { %v578_v9 = vmul.f32 %v565_v45, %v540_v7  ;;  %v579_v10 = vmul.f32 %v569_v46, %v540_v7  ;;  %v580_v17 = vmul.f32 %v573_v47, %v540_v7  ;;  %v581_v18 = vmul.f32 %v577_v48, %v540_v7 }
 0x252   : > { %v626_v19 = vmul.f32 %v613_v57, %v588_v8  ;;  %v627_v20 = vmul.f32 %v617_v58, %v588_v8  ;;  %v628_v21 = vmul.f32 %v621_v59, %v588_v8  ;;  %v629_v22 = vmul.f32 %v625_v60, %v588_v8 }
 0x253   : > { %v582_v23 = vadd.f32 %v578_v9, %v534_v61  ;;  %v583_v24 = vadd.f32 %v579_v10, %v535_v62  ;;  %v584_v27 = vadd.f32 %v580_v17, %v536_v63  ;;  %v585_v28 = vadd.f32 %v581_v18, %v537_v6 }
 0x255   : > { %v630_v29 = vadd.f32 %v626_v19, %v582_v23  ;;  %v631_v30 = vadd.f32 %v627_v20, %v583_v24  ;;  %v632_v31 = vadd.f32 %v628_v21, %v584_v27  ;;  %v633_v32 = vadd.f32 %v629_v22, %v585_v28  ;;  %v637_v33 = vpop.permute.xlu1 %636  ;;  %v674_v47 = vpop.permute.xlu0 %673 }
 0x257   : > { %v639_v34 = vadd.f32 %v637_v33, %v630_v29  ;;  %v640_v35 = vadd.f32 %v637_v33, %v631_v30  ;;  %v641_v36 = vadd.f32 %v637_v33, %v632_v31  ;;  %v642_v37 = vadd.f32 %v637_v33, %v633_v32 }
 0x259   : > { %v1731_v38 = vmax.f32 %v639_v34, 0.0  ;;  %v1733_v39 = vmax.f32 %v640_v35, 0.0  ;;  %v1735_v40 = vmax.f32 %v641_v36, 0.0  ;;  %v1737_v41 = vmax.f32 %v642_v37, 0.0  ;;  %v650_v42 = vpop.permute.xlu1 %649 }
 0x25a   : > { %v758_v32 = vpop.permute.xlu0 %757 }
 0x25b   : > { %v679_v43 = vrot.slane %v1731_v38, %v1667_v11  ;;  %v683_v44 = vrot.slane %v1733_v39, %v1667_v11  ;;  %v687_v45 = vrot.slane %v1735_v40, %v1667_v11  ;;  %v691_v46 = vrot.slane %v1737_v41, %v1667_v11 }
 0x25c   : > { %v655_v48 = vrot.slane %v1731_v38, %v1671_v13  ;;  %v659_v49 = vrot.slane %v1733_v39, %v1671_v13  ;;  %v663_v50 = vrot.slane %v1735_v40, %v1671_v13  ;;  %v667_v51 = vrot.slane %v1737_v41, %v1671_v13 }
 0x25d   : > { %v692_v52 = vmul.f32 %v679_v43, %v674_v47  ;;  %v693_v53 = vmul.f32 %v683_v44, %v674_v47  ;;  %v694_v54 = vmul.f32 %v687_v45, %v674_v47  ;;  %v695_v55 = vmul.f32 %v691_v46, %v674_v47 }
 0x25e   : > { %v668_v56 = vmul.f32 %v655_v48, %v650_v42  ;;  %v669_v57 = vmul.f32 %v659_v49, %v650_v42  ;;  %v670_v11 = vmul.f32 %v663_v50, %v650_v42  ;;  %v671_v58 = vmul.f32 %v667_v51, %v650_v42  ;;  %v702_v59 = vpop.permute.xlu1 %701 }
 0x25f   : > { %v763_v60 = vrot.slane %v1731_v38, %v1673_v14  ;;  %v767_v61 = vrot.slane %v1733_v39, %v1673_v14  ;;  %v771_v62 = vrot.slane %v1735_v40, %v1673_v14  ;;  %v775_v13 = vrot.slane %v1737_v41, %v1673_v14 }
 0x260   : > { %v696_v63 = vadd.f32 %v692_v52, %v668_v56  ;;  %v697_v6 = vadd.f32 %v693_v53, %v669_v57  ;;  %v698_v7 = vadd.f32 %v694_v54, %v670_v11  ;;  %v699_v8 = vadd.f32 %v695_v55, %v671_v58 }
 0x261   : > { %v707_v9 = vrot.slane %v1731_v38, %v1675_v15  ;;  %v711_v10 = vrot.slane %v1733_v39, %v1675_v15  ;;  %v715_v17 = vrot.slane %v1735_v40, %v1675_v15  ;;  %v719_v18 = vrot.slane %v1737_v41, %v1675_v15 }
 0x262   : > { %v735_v19 = vrot.slane %v1731_v38, %v1695_v25  ;;  %v739_v14 = vrot.slane %v1733_v39, %v1695_v25  ;;  %v743_v20 = vrot.slane %v1735_v40, %v1695_v25  ;;  %v747_v21 = vrot.slane %v1737_v41, %v1695_v25 }
 0x263   : > { %v730_v22 = vpop.permute.xlu1 %729  ;;  %v720_v23 = vmul.f32 %v707_v9, %v702_v59  ;;  %v721_v24 = vmul.f32 %v711_v10, %v702_v59  ;;  %v722_v27 = vmul.f32 %v715_v17, %v702_v59  ;;  %v723_v28 = vmul.f32 %v719_v18, %v702_v59 }
 0x264   : > { %v748_v29 = vmul.f32 %v735_v19, %v730_v22  ;;  %v749_v30 = vmul.f32 %v739_v14, %v730_v22  ;;  %v750_v15 = vmul.f32 %v743_v20, %v730_v22  ;;  %v751_v31 = vmul.f32 %v747_v21, %v730_v22 }
 0x265   : > { %v724_v33 = vadd.f32 %v720_v23, %v696_v63  ;;  %v725_v34 = vadd.f32 %v721_v24, %v697_v6  ;;  %v726_v35 = vadd.f32 %v722_v27, %v698_v7  ;;  %v727_v36 = vadd.f32 %v723_v28, %v699_v8 }
 0x266   : > { %v791_v37 = vrot.slane %v1731_v38, %v1669_v12  ;;  %v795_v25 = vrot.slane %v1733_v39, %v1669_v12  ;;  %v799_v42 = vrot.slane %v1735_v40, %v1669_v12  ;;  %v803_v43 = vrot.slane %v1737_v41, %v1669_v12 }
 0x267   : > { %v752_v44 = vadd.f32 %v748_v29, %v724_v33  ;;  %v753_v45 = vadd.f32 %v749_v30, %v725_v34  ;;  %v754_v46 = vadd.f32 %v750_v15, %v726_v35  ;;  %v755_v47 = vadd.f32 %v751_v31, %v727_v36 }
 0x268   : > { %v786_v48 = vpop.permute.xlu1 %785  ;;  %v778_v49 = vmul.f32 %v771_v62, %v758_v32  ;;  %v779_v50 = vmul.f32 %v775_v13, %v758_v32  ;;  %v776_v53 = vmul.f32 %v763_v60, %v758_v32  ;;  %v777_v54 = vmul.f32 %v767_v61, %v758_v32  ;;  %v842_v60 = vpop.permute.xlu0 %841 }
 0x269   : > { %v806_v51 = vmul.f32 %v799_v42, %v786_v48  ;;  %v807_v52 = vmul.f32 %v803_v43, %v786_v48  ;;  %v804_v55 = vmul.f32 %v791_v37, %v786_v48  ;;  %v805_v56 = vmul.f32 %v795_v25, %v786_v48  ;;  %v868_v42 = vld [vmem:[#allocation4] sm:$0xff] }
 0x26a   : > { %v819_v57 = vrot.slane %v1731_v38, %v1677_v16  ;;  %v823_v11 = vrot.slane %v1733_v39, %v1677_v16  ;;  %v782_v12 = vadd.f32 %v778_v49, %v754_v46  ;;  %v783_v58 = vadd.f32 %v779_v50, %v755_v47  ;;  %v879_v47 = vld [vmem:[#allocation5] sm:$0xff] }
 0x26b   : > { %v827_v59 = vrot.slane %v1735_v40, %v1677_v16  ;;  %v831_v62 = vrot.slane %v1737_v41, %v1677_v16  ;;  %v780_v13 = vadd.f32 %v776_v53, %v752_v44  ;;  %v781_v63 = vadd.f32 %v777_v54, %v753_v45 }
 0x26c   : > { %v810_v6 = vadd.f32 %v806_v51, %v782_v12  ;;  %v811_v7 = vadd.f32 %v807_v52, %v783_v58  ;;  %v855_v8 = vrot.slane %v1735_v40, %v1697_v26  ;;  %v859_v9 = vrot.slane %v1737_v41, %v1697_v26 }
 0x26d   : > { %v814_v61 = vpop.permute.xlu1 %813  ;;  %v808_v14 = vadd.f32 %v804_v55, %v780_v13  ;;  %v809_v20 = vadd.f32 %v805_v56, %v781_v63  ;;  %v847_v16 = vrot.slane %v1731_v38, %v1697_v26  ;;  %v851_v21 = vrot.slane %v1733_v39, %v1697_v26 }
 0x26e   : > { %v832_v10 = vmul.f32 %v819_v57, %v814_v61  ;;  %v833_v17 = vmul.f32 %v823_v11, %v814_v61  ;;  %v834_v18 = vmul.f32 %v827_v59, %v814_v61  ;;  %v835_v19 = vmul.f32 %v831_v62, %v814_v61 }
 0x26f   : > { %v862_v24 = vmul.f32 %v855_v8, %v842_v60  ;;  %v863_v27 = vmul.f32 %v859_v9, %v842_v60  ;;  %v860_v29 = vmul.f32 %v847_v16, %v842_v60  ;;  %v861_v41 = vmul.f32 %v851_v21, %v842_v60 }
 0x270   : > { %v838_v22 = vadd.f32 %v834_v18, %v810_v6  ;;  %v839_v23 = vadd.f32 %v835_v19, %v811_v7  ;;  %v836_v40 = vadd.f32 %v832_v10, %v808_v14  ;;  %v837_v28 = vadd.f32 %v833_v17, %v809_v20 }
 0x272   : > { %v866_v30 = vadd.f32 %v862_v24, %v838_v22  ;;  %v867_v15 = vadd.f32 %v863_v27, %v839_v23  ;;  %v864_v31 = vadd.f32 %v860_v29, %v836_v40  ;;  %v865_v32 = vadd.f32 %v861_v41, %v837_v28 }
 0x274   : > { %v872_v33 = vadd.f32 %v867_v15, %v866_v30  ;;  %v882_v34 = vmul.f32 %v866_v30, %v866_v30  ;;  %v883_v35 = vmul.f32 %v867_v15, %v867_v15  ;;  %v869_v36 = vadd.f32 %v865_v32, %v864_v31 }
 0x275   : > { %v880_v38 = vmul.f32 %v864_v31, %v864_v31  ;;  %v881_v37 = vmul.f32 %v865_v32, %v865_v32 }
 0x276   : > { %873 = vadd.xlane.f32.xlu0 %v872_v33  ;;  %870 = vadd.xlane.f32.xlu1 %v869_v36  ;;  %v887_v26 = vadd.f32 %v883_v35, %v882_v34 }
 0x277   : > { %v884_v39 = vadd.f32 %v881_v37, %v880_v38 }
 0x27a   : > { %888 = vadd.xlane.f32.xlu0 %v887_v26  ;;  %885 = vadd.xlane.f32.xlu1 %v884_v39 }
 0x2ff   : > { %v874_v25 = vpop.xlane.xlu0 %873  ;;  %v871_v43 = vpop.xlane.xlu1 %870 }
 0x300   : > { %v875_v44 = vadd.f32 %v874_v25, %v871_v43 }
 0x302   : > { %v876_v45 = vadd.f32 %v875_v44, %v868_v42 }
 0x303   : > { %v889_v46 = vpop.xlane.xlu0 %888  ;;  %v886_v48 = vpop.xlane.xlu1 %885 }
 0x304   : > { %878 = vst.msk [vmem:[#allocation4] sm:$0xff] %vm877_vm1, %v876_v45  ;;  %v890_v49 = vadd.f32 %v889_v46, %v886_v48 }
 0x306   : > { %v891_v50 = vadd.f32 %v890_v49, %v879_v47 }
 0x308   : > { %892 = vst.msk [vmem:[#allocation5] sm:$0xff] %vm877_vm1, %v891_v50 }
 0x309 PF: > { %p1416_p5 = scmp.ne.s32.totalorder %s1594_s19, 2 }
 0x30b   : > { %896 = sbr.rel (%p1416_p5) target bundleno = 1112 (0x458), region = 52 }
 0x310   : > { %v897_v51 = vld [vmem:[#allocation2] sm:$0xff]  ;;  %v899_v52 = vld [vmem:[#allocation3] sm:$0xff]  ;;  %v1119_v53 = vld [vmem:[#allocation4] sm:$0xff]  ;;  %v1547_v54 = vmov 0   ;;  %v1548_v18 = vmov 2   ;;  %v1549_v22 = vmov 1   ;;  %v922_v28 = vlaneseq }
 0x311   : > { %1478 = vset.pattern.permute.xlu0 %v1547_v54  ;;  %v898_v55 = vmul.f32 0.001953125, %v897_v51  ;;  %v900_v56 = vmul.f32 0.001953125, %v899_v52  ;;  %v1120_v57 = vmul.f32 0.001953125, %v1119_v53  ;;  %v1121_v11 = vld [vmem:[#allocation5] sm:$0xff]  ;;  %1479 = vset.pattern.permute.xlu1 %v1547_v54  ;;  %v1550_v23 = vmov 3  }
 0x312   : > { %v1122_v12 = vmul.f32 0.001953125, %v1121_v11  ;;  %v1553_v24 = vmov 5   ;;  %v1554_v27 = vmov 7   ;;  %v923_v29 = vshrl.u32 %v922_v28, 7 }
 0x313   : > { %v901_v58 = vmul.f32 %v898_v55, %v898_v55  ;;  %v1123_v59 = vmul.f32 %v1120_v57, %v1120_v57 }
 0x314   : > { %v1816_v41 = vsub.s32 0, %v923_v29  ;;  %v1818_v30 = vsub.s32 4, %v923_v29  ;;  %v1820_v15 = vsub.s32 1, %v923_v29  ;;  %v1822_v31 = vsub.s32 5, %v923_v29 }
 0x315   : > { %v902_v62 = vsub.f32 %v900_v56, %v901_v58  ;;  %v1124_v13 = vsub.f32 %v1122_v12, %v1123_v59  ;;  %v1824_v32 = vsub.s32 2, %v923_v29  ;;  %v1826_v33 = vsub.s32 6, %v923_v29 }
 0x316   : > { %v1828_v34 = vsub.s32 3, %v923_v29  ;;  %v925_v35 = vrot.slane %v1611_v2, %v1816_v41  ;;  %v929_v36 = vrot.slane %v1611_v2, %v1818_v30  ;;  %v933_v38 = vrot.slane %v1616_v3, %v1816_v41 }
 0x317   : > { %v903_v63 = vmax.f32 %v902_v62, 0.0  ;;  %v1125_v60 = vmax.f32 %v1124_v13, 0.0  ;;  %v937_v37 = vrot.slane %v1616_v3, %v1818_v30  ;;  %v969_v26 = vrot.slane %v1611_v2, %v1820_v15 }
 0x318   : > { %v973_v39 = vrot.slane %v1611_v2, %v1822_v31  ;;  %v977_v25 = vrot.slane %v1616_v3, %v1820_v15  ;;  %v981_v42 = vrot.slane %v1616_v3, %v1822_v31  ;;  %v1017_v43 = vrot.slane %v1611_v2, %v1824_v32 }
 0x319   : > { %v904_v61 = vadd.f32 1e-05, %v903_v63  ;;  %v1126_v6 = vadd.f32 1e-05, %v1125_v60  ;;  %v1021_v44 = vrot.slane %v1611_v2, %v1826_v33  ;;  %v1025_v45 = vrot.slane %v1616_v3, %v1824_v32 }
 0x31a   : > { %v1029_v46 = vrot.slane %v1616_v3, %v1826_v33  ;;  %v1065_v48 = vrot.slane %v1611_v2, %v1828_v34  ;;  %v1073_v50 = vrot.slane %v1616_v3, %v1828_v34  ;;  %v945_v52 = vrot.slane %v925_v35, %v1816_v41 }
 0x31b   : > { %1494 = vrsqrt.f32 %v904_v61  ;;  %v949_v53 = vrot.slane %v929_v36, %v1816_v41  ;;  %v989_v56 = vrot.slane %v969_v26, %v1820_v15  ;;  %v1001_v11 = vrot.slane %v981_v42, %v1820_v15 }
 0x31c   : > { %1496 = vrsqrt.f32 %v1126_v6  ;;  %v1037_v12 = vrot.slane %v1017_v43, %v1824_v32  ;;  %v1045_v58 = vrot.slane %v1025_v45, %v1824_v32  ;;  %v1049_v59 = vrot.slane %v1029_v46, %v1824_v32 }
 0x31d   : > { %v1085_v13 = vrot.slane %v1065_v48, %v1828_v34  ;;  %v1093_v60 = vrot.slane %v1073_v50, %v1828_v34 }
 0x328   : > { %v1495_v7 = vpop.eup %1494 }
 0x329   : > { %v1497_v8 = vpop.eup %1496  ;;  %v906_v9 = vmul.f32 %v1495_v7, %v1601_v0 }
 0x32a   : > { %v1128_v17 = vmul.f32 %v1497_v8, %v1601_v0 }
 0x32b   : > { %911 = vperm.xlu0 %1478, %v906_v9   ;;  %v907_v10 = vmul.f32 %v906_v9, %v898_v55  ;;  %v957_v55 = vrot.slane %v937_v37, %v1816_v41 }
 0x32c   : > { %v1129_v19 = vmul.f32 %v1128_v17, %v1120_v57  ;;  %v993_v57 = vrot.slane %v973_v39, %v1820_v15 }
 0x32d   : > { %v908_v0 = vsub.f32 %v1606_v1, %v907_v10 }
 0x32e   : > { %v1130_v40 = vsub.f32 %v1606_v1, %v1129_v19  ;;  %v1830_v1 = vsub.s32 7, %v923_v29 }
 0x32f   : > { %1133 = vperm.xlu0 %1478, %v1128_v17  }
 0x330   : > { %v1069_v49 = vrot.slane %v1611_v2, %v1830_v1  ;;  %v1077_v51 = vrot.slane %v1616_v3, %v1830_v1  ;;  %v997_v2 = vrot.slane %v977_v25, %v1820_v15  ;;  %v1041_v3 = vrot.slane %v1021_v44, %v1824_v32 }
 0x332   : > { %v1089_v63 = vrot.slane %v1069_v49, %v1828_v34  ;;  %v1097_v61 = vrot.slane %v1077_v51, %v1828_v34 }
 0x333   : > { %1481 = vset.pattern.permute.xlu0 %v1548_v18 }
 0x3a6   : > { %v912_v14 = vpop.permute.xlu0 %911 }
 0x3a7   : > { %v914_v20 = vmul.f32 %v912_v14, %v1621_v4  ;;  %v1551_v4 = vmov 6  }
 0x3a9   : > { %1011 = vperm.xlu0 %1481, %v914_v20   ;;  %917 = vperm.xlu1 %1479, %v914_v20  }
 0x3aa   : > { %v1134_v16 = vpop.permute.xlu0 %1133 }
 0x3ab   : > { %v1136_v21 = vmul.f32 %v1134_v16, %v1626_v5  ;;  %v1552_v5 = vmov 4  }
 0x3ad   : > { %1484 = vset.pattern.permute.xlu0 %v1547_v54  ;;  %1480 = vset.pattern.permute.xlu1 %v1549_v22 }
 0x3ae   : > { %963 = vperm.xlu1 %1480, %v914_v20   ;;  %1139 = vperm.xlu0 %1484, %v1136_v21  }
 0x3b2   : > { %1482 = vset.pattern.permute.xlu1 %v1550_v23  ;;  %1487 = vset.pattern.permute.xlu0 %v1550_v23 }
 0x3b3   : > { %1059 = vperm.xlu1 %1482, %v914_v20   ;;  %1219 = vperm.xlu0 %1487, %v1136_v21  }
 0x3b7   : > { %1483 = vset.pattern.permute.xlu1 %v1547_v54  ;;  %1490 = vset.pattern.permute.xlu0 %v1551_v4 }
 0x3b8   : > { %1303 = vperm.xlu0 %1490, %v1136_v21   ;;  %1108 = vperm.xlu1 %1483, %v908_v0  }
 0x3bc   : > { %1485 = vset.pattern.permute.xlu1 %v1549_v22  ;;  %1493 = vset.pattern.permute.xlu0 %v1547_v54 }
 0x3bd   : > { %1163 = vperm.xlu1 %1485, %v1136_v21  }
 0x3c1   : > { %1486 = vset.pattern.permute.xlu1 %v1548_v18 }
 0x3c2   : > { %1191 = vperm.xlu1 %1486, %v1136_v21  }
 0x3c6   : > { %1488 = vset.pattern.permute.xlu1 %v1552_v5 }
 0x3c7   : > { %1247 = vperm.xlu1 %1488, %v1136_v21  }
 0x3cb   : > { %1489 = vset.pattern.permute.xlu1 %v1553_v24 }
 0x3cc   : > { %1275 = vperm.xlu1 %1489, %v1136_v21  }
 0x3d0   : > { %1491 = vset.pattern.permute.xlu1 %v1554_v27 }
 0x3d1   : > { %1331 = vperm.xlu1 %1491, %v1136_v21  }
 0x3d5   : > { %1492 = vset.pattern.permute.xlu1 %v1547_v54  ;;  %v953_v54 = vrot.slane %v933_v38, %v1816_v41 }
 0x3d6   : > { %1360 = vperm.xlu1 %1492, %v1130_v40  }
 0x424   : > { %v918_v47 = vpop.permute.xlu1 %917  ;;  %v1012_v62 = vpop.permute.xlu0 %1011 }
 0x425   : > { %v958_v6 = vmul.f32 %v945_v52, %v918_v47  ;;  %v959_v7 = vmul.f32 %v949_v53, %v918_v47  ;;  %v960_v8 = vmul.f32 %v953_v54, %v918_v47  ;;  %v961_v9 = vmul.f32 %v957_v55, %v918_v47 }
 0x426   : > { %v1050_v20 = vmul.f32 %v1037_v12, %v1012_v62  ;;  %v1051_v16 = vmul.f32 %v1041_v3, %v1012_v62  ;;  %v1052_v21 = vmul.f32 %v1045_v58, %v1012_v62  ;;  %v1053_v22 = vmul.f32 %v1049_v59, %v1012_v62 }
 0x429   : > { %v964_v10 = vpop.permute.xlu1 %963 }
 0x42a   : > { %v1002_v17 = vmul.f32 %v989_v56, %v964_v10  ;;  %v1003_v18 = vmul.f32 %v993_v57, %v964_v10  ;;  %v1004_v19 = vmul.f32 %v997_v2, %v964_v10  ;;  %v1005_v14 = vmul.f32 %v1001_v11, %v964_v10  ;;  %v1140_v57 = vpop.permute.xlu0 %1139 }
 0x42c   : > { %v1006_v23 = vadd.f32 %v1002_v17, %v958_v6  ;;  %v1007_v0 = vadd.f32 %v1003_v18, %v959_v7  ;;  %v1008_v4 = vadd.f32 %v1004_v19, %v960_v8  ;;  %v1009_v5 = vadd.f32 %v1005_v14, %v961_v9 }
 0x42e   : > { %v1060_v24 = vpop.permute.xlu1 %1059  ;;  %v1054_v27 = vadd.f32 %v1050_v20, %v1006_v23  ;;  %v1055_v40 = vadd.f32 %v1051_v16, %v1007_v0  ;;  %v1056_v28 = vadd.f32 %v1052_v21, %v1008_v4  ;;  %v1057_v29 = vadd.f32 %v1053_v22, %v1009_v5  ;;  %v1220_v4 = vpop.permute.xlu0 %1219 }
 0x42f   : > { %v1098_v35 = vmul.f32 %v1085_v13, %v1060_v24  ;;  %v1099_v36 = vmul.f32 %v1089_v63, %v1060_v24  ;;  %v1100_v38 = vmul.f32 %v1093_v60, %v1060_v24  ;;  %v1101_v37 = vmul.f32 %v1097_v61, %v1060_v24 }
 0x431   : > { %v1102_v26 = vadd.f32 %v1098_v35, %v1054_v27  ;;  %v1103_v39 = vadd.f32 %v1099_v36, %v1055_v40  ;;  %v1104_v25 = vadd.f32 %v1100_v38, %v1056_v28  ;;  %v1105_v42 = vadd.f32 %v1101_v37, %v1057_v29 }
 0x433   : > { %v1109_v43 = vpop.permute.xlu1 %1108 }
 0x434   : > { %v1111_v44 = vadd.f32 %v1109_v43, %v1102_v26  ;;  %v1112_v45 = vadd.f32 %v1109_v43, %v1103_v39  ;;  %v1113_v46 = vadd.f32 %v1109_v43, %v1104_v25  ;;  %v1114_v47 = vadd.f32 %v1109_v43, %v1105_v42 }
 0x436   : > { %v1880_v48 = vmax.f32 %v1111_v44, 0.0  ;;  %v1882_v49 = vmax.f32 %v1112_v45, 0.0  ;;  %v1884_v50 = vmax.f32 %v1113_v46, 0.0  ;;  %v1886_v51 = vmax.f32 %v1114_v47, 0.0 }
 0x438   : > { %v1145_v52 = vrot.slane %v1880_v48, %v1816_v41  ;;  %v1149_v53 = vrot.slane %v1882_v49, %v1816_v41  ;;  %v1153_v54 = vrot.slane %v1884_v50, %v1816_v41  ;;  %v1157_v55 = vrot.slane %v1886_v51, %v1816_v41  ;;  %v1164_v56 = vpop.permute.xlu1 %1163 }
 0x439   : > { %v1169_v2 = vrot.slane %v1880_v48, %v1820_v15  ;;  %v1173_v11 = vrot.slane %v1882_v49, %v1820_v15  ;;  %v1177_v12 = vrot.slane %v1884_v50, %v1820_v15  ;;  %v1181_v3 = vrot.slane %v1886_v51, %v1820_v15 }
 0x43a   : > { %v1158_v58 = vmul.f32 %v1145_v52, %v1140_v57  ;;  %v1159_v59 = vmul.f32 %v1149_v53, %v1140_v57  ;;  %v1160_v62 = vmul.f32 %v1153_v54, %v1140_v57  ;;  %v1161_v13 = vmul.f32 %v1157_v55, %v1140_v57 }
 0x43b   : > { %v1182_v63 = vmul.f32 %v1169_v2, %v1164_v56  ;;  %v1183_v41 = vmul.f32 %v1173_v11, %v1164_v56  ;;  %v1184_v60 = vmul.f32 %v1177_v12, %v1164_v56  ;;  %v1185_v61 = vmul.f32 %v1181_v3, %v1164_v56 }
 0x43c   : > { %v1197_v6 = vrot.slane %v1880_v48, %v1824_v32  ;;  %v1201_v7 = vrot.slane %v1882_v49, %v1824_v32  ;;  %v1205_v8 = vrot.slane %v1884_v50, %v1824_v32  ;;  %v1209_v15 = vrot.slane %v1886_v51, %v1824_v32 }
 0x43d   : > { %v1186_v9 = vadd.f32 %v1182_v63, %v1158_v58  ;;  %v1187_v10 = vadd.f32 %v1183_v41, %v1159_v59  ;;  %v1188_v17 = vadd.f32 %v1184_v60, %v1160_v62  ;;  %v1189_v18 = vadd.f32 %v1185_v61, %v1161_v13  ;;  %v1192_v19 = vpop.permute.xlu1 %1191 }
 0x43e   : > { %v1210_v14 = vmul.f32 %v1197_v6, %v1192_v19  ;;  %v1211_v20 = vmul.f32 %v1201_v7, %v1192_v19  ;;  %v1212_v16 = vmul.f32 %v1205_v8, %v1192_v19  ;;  %v1213_v21 = vmul.f32 %v1209_v15, %v1192_v19  ;;  %v1304_v8 = vpop.permute.xlu0 %1303 }
 0x43f   : > { %v1225_v22 = vrot.slane %v1880_v48, %v1828_v34  ;;  %v1229_v23 = vrot.slane %v1882_v49, %v1828_v34  ;;  %v1233_v0 = vrot.slane %v1884_v50, %v1828_v34  ;;  %v1237_v32 = vrot.slane %v1886_v51, %v1828_v34 }
 0x440   : > { %v1214_v5 = vadd.f32 %v1210_v14, %v1186_v9  ;;  %v1215_v24 = vadd.f32 %v1211_v20, %v1187_v10  ;;  %v1216_v27 = vadd.f32 %v1212_v16, %v1188_v17  ;;  %v1217_v40 = vadd.f32 %v1213_v21, %v1189_v18 }
 0x441   : > { %v1238_v28 = vmul.f32 %v1225_v22, %v1220_v4  ;;  %v1239_v29 = vmul.f32 %v1229_v23, %v1220_v4  ;;  %v1240_v35 = vmul.f32 %v1233_v0, %v1220_v4  ;;  %v1241_v36 = vmul.f32 %v1237_v32, %v1220_v4 }
 0x442   : > { %v1253_v38 = vrot.slane %v1880_v48, %v1818_v30  ;;  %v1257_v37 = vrot.slane %v1882_v49, %v1818_v30  ;;  %v1261_v26 = vrot.slane %v1884_v50, %v1818_v30  ;;  %v1265_v34 = vrot.slane %v1886_v51, %v1818_v30  ;;  %v1248_v39 = vpop.permute.xlu1 %1247 }
 0x443   : > { %v1242_v25 = vadd.f32 %v1238_v28, %v1214_v5  ;;  %v1243_v42 = vadd.f32 %v1239_v29, %v1215_v24  ;;  %v1244_v43 = vadd.f32 %v1240_v35, %v1216_v27  ;;  %v1245_v44 = vadd.f32 %v1241_v36, %v1217_v40 }
 0x444   : > { %v1266_v45 = vmul.f32 %v1253_v38, %v1248_v39  ;;  %v1267_v46 = vmul.f32 %v1257_v37, %v1248_v39  ;;  %v1268_v47 = vmul.f32 %v1261_v26, %v1248_v39  ;;  %v1269_v52 = vmul.f32 %v1265_v34, %v1248_v39 }
 0x445   : > { %v1281_v53 = vrot.slane %v1880_v48, %v1822_v31  ;;  %v1285_v54 = vrot.slane %v1882_v49, %v1822_v31  ;;  %v1289_v55 = vrot.slane %v1884_v50, %v1822_v31  ;;  %v1293_v30 = vrot.slane %v1886_v51, %v1822_v31 }
 0x446   : > { %v1270_v56 = vadd.f32 %v1266_v45, %v1242_v25  ;;  %v1271_v57 = vadd.f32 %v1267_v46, %v1243_v42  ;;  %v1272_v2 = vadd.f32 %v1268_v47, %v1244_v43  ;;  %v1273_v11 = vadd.f32 %v1269_v52, %v1245_v44 }
 0x447   : > { %v1276_v12 = vpop.permute.xlu1 %1275  ;;  %v1309_v13 = vrot.slane %v1880_v48, %v1826_v33  ;;  %v1313_v63 = vrot.slane %v1882_v49, %v1826_v33  ;;  %v1317_v41 = vrot.slane %v1884_v50, %v1826_v33  ;;  %v1321_v31 = vrot.slane %v1886_v51, %v1826_v33 }
 0x448   : > { %v1294_v3 = vmul.f32 %v1281_v53, %v1276_v12  ;;  %v1295_v58 = vmul.f32 %v1285_v54, %v1276_v12  ;;  %v1296_v59 = vmul.f32 %v1289_v55, %v1276_v12  ;;  %v1297_v62 = vmul.f32 %v1293_v30, %v1276_v12 }
 0x449   : > { %v1337_v15 = vrot.slane %v1880_v48, %v1830_v1  ;;  %v1341_v9 = vrot.slane %v1882_v49, %v1830_v1  ;;  %v1345_v10 = vrot.slane %v1884_v50, %v1830_v1  ;;  %v1349_v17 = vrot.slane %v1886_v51, %v1830_v1 }
 0x44a   : > { %v1298_v60 = vadd.f32 %v1294_v3, %v1270_v56  ;;  %v1299_v61 = vadd.f32 %v1295_v58, %v1271_v57  ;;  %v1300_v6 = vadd.f32 %v1296_v59, %v1272_v2  ;;  %v1301_v7 = vadd.f32 %v1297_v62, %v1273_v11 }
 0x44b   : > { %v1322_v19 = vmul.f32 %v1309_v13, %v1304_v8  ;;  %v1323_v33 = vmul.f32 %v1313_v63, %v1304_v8  ;;  %v1324_v14 = vmul.f32 %v1317_v41, %v1304_v8  ;;  %v1325_v20 = vmul.f32 %v1321_v31, %v1304_v8 }
 0x44c   : > { %v1332_v18 = vpop.permute.xlu1 %1331 }
 0x44d   : > { %v1350_v16 = vmul.f32 %v1337_v15, %v1332_v18  ;;  %v1351_v21 = vmul.f32 %v1341_v9, %v1332_v18  ;;  %v1352_v22 = vmul.f32 %v1345_v10, %v1332_v18  ;;  %v1353_v23 = vmul.f32 %v1349_v17, %v1332_v18 }
 0x44e   : > { %v1326_v0 = vadd.f32 %v1322_v19, %v1298_v60  ;;  %v1327_v48 = vadd.f32 %v1323_v33, %v1299_v61  ;;  %v1328_v32 = vadd.f32 %v1324_v14, %v1300_v6  ;;  %v1329_v4 = vadd.f32 %v1325_v20, %v1301_v7 }
 0x450   : > { %v1354_v49 = vadd.f32 %v1350_v16, %v1326_v0  ;;  %v1355_v5 = vadd.f32 %v1351_v21, %v1327_v48  ;;  %v1356_v24 = vadd.f32 %v1352_v22, %v1328_v32  ;;  %v1357_v50 = vadd.f32 %v1353_v23, %v1329_v4 }
 0x451   : > { %v1361_v27 = vpop.permute.xlu1 %1360 }
 0x452   : > { %v1363_v40 = vadd.f32 %v1361_v27, %v1354_v49  ;;  %v1364_v1 = vadd.f32 %v1361_v27, %v1355_v5  ;;  %v1365_v51 = vadd.f32 %v1361_v27, %v1356_v24  ;;  %v1366_v28 = vadd.f32 %v1361_v27, %v1357_v50 }
 0x454   : > { %v1367_v29 = vmax.f32 %v1363_v40, 0.0  ;;  %v1368_v35 = vmax.f32 %v1364_v1, 0.0  ;;  %v1369_v36 = vmax.f32 %v1365_v51, 0.0  ;;  %v1370_v38 = vmax.f32 %v1366_v28, 0.0 }
 0x456   : > { %1371 = vst [vmem:[#allocation6] sm:$0xff] %v1367_v29  ;;  %1372 = vst [vmem:[#allocation6 + $0x8] sm:$0xff] %v1368_v35 }
 0x457   : > { %1373 = vst [vmem:[#allocation6 + $0x10] sm:$0xff] %v1369_v36  ;;  %1374 = vst [vmem:[#allocation6 + $0x18] sm:$0xff] %v1370_v38 }
 0x458 PF: > { %p1425_p6 = scmp.eq.s32.totalorder %s1594_s19, 2  ;;  %s1555_s7 = smov [#allocation6]  }
 0x459   : > { %s1381_s8 = sshll.u32 %s1555_s7, 4  ;;  %s1382_s8 = int_to_ptr.vmem [resolvable:$true] %s1381_s8 }
 0x45a   : > { %s1498_s9 = scalar_lea.vmem %s1382_s8, 512  ;;  %p1505_p10 = scmp.lt.s32.totalorder %s1382_s8, %s1382_s8 }
 0x45b   : > { %p1499_p7 = scmp.ne.s32.totalorder %s1382_s8, %s1498_s9  ;;  %p1506_p11 = scmp.lt.s32.totalorder %s1498_s9, %s1498_s9 }
 0x45d   : > { %p1500_p8 = pnand %p1499_p7, %p1425_p6  ;;  %p1507_p12 = por %p1506_p11, %p1505_p10 }
 0x45f   : > { %p1501_p9 = pneg %p1500_p8 }
 0x461   : > { %p1508_p13 = pnand %p1507_p12, %p1501_p9 }
 0x463   : > { %1511 = shalt.err (!%p1508_p13)
}
 0x464   : > { %s1556_s10 = smov 256   ;;  %s1557_s11 = smov 16  }
 0x465   : > { %1422 = dma.vmem_to_hbm [thread:$0]  (%p1425_p6), %s1382_s8, 512, %s1972_s5, [#allocation7], %s1556_s10, %s1556_s10, %s1557_s11  }
 0x466   : > { %1527 = dma.done.wait (%p1425_p6), [#allocation7], 512  }
 0x467   : > { %1529 = vsyncadd (%p1425_p6), [#allocation7], 4294966784 }
 0x468 PF: > { %s16_s18 = sadd.s32 1, %s1532_s18  }
 0x469   : > { %p13_p0 = scmp.ge.s32.totalorder %s16_s18, 5  }
 0x46b   :  { %15 = sbr.rel (!%p13_p0) target bundleno = 1 (0x1), region = 76 }
 0x470   :  { %1397 = vsyncpa [#allocation7], 1 }
 0x471   :  { %1399 = vsyncpa [#allocation7 + $0x1], 1 }

</bundles_post_ra>
